<compile_context>
chip_gen: v7x
topology: tpu7x:2x2x1
jax: 0.10.0
libtpu: 0.0.40
codegen_flags: <defaults>
</compile_context>

<pallas_src>
from functools import partial

import jax
import jax.numpy as jnp
from jax import lax
from jax.experimental import pallas as pl
from jax.experimental.pallas import tpu as pltpu

# ----------------------- configuration (small shapes) -----------------------
B, L = 2, 8                 # batch, paragraph length (sentences)
E = 32                      # embed_size
H = 4                       # heads
D = E // H                  # head dim
NL = 2                      # num_layers
FE = 4                      # forward_expansion
FF = FE * E                 # ffn hidden = 128
NUM_LABELS = 4
T = NUM_LABELS + 2          # CRF tag count = len(label_list) + 2
VOCAB = 50
MAX_SEQ_LEN = 20
SRC_PAD_IDX = 0
TRG_PAD_IDX = 0
LN_EPS = 1e-5
SCALE = 1.0 / (D ** 0.5)    # NOTE: head-dim scaling (see correctness note)


# ------------------------------ Pallas kernel --------------------------------
def _fused_kernel(src_ref, wemb_ref, pemb_ref,
                  wqkv_ref, bqkv_ref, wo_ref, bo_ref,
                  ln1g_ref, ln1b_ref, w1_ref, b1_ref, w2_ref, b2_ref,
                  ln2g_ref, ln2b_ref, wout_ref, bout_ref,
                  out_ref):
    """Embedding gather + transformer-encoder stack + fc_out, fused in VMEM."""
    bf16 = jnp.bfloat16
    ids = src_ref[...]                                        # (B, L) int32

    # --- embedding gather via one-hot matmul (MXU), pos-emb add -------------
    onehot = (ids[:, :, None] ==
              lax.broadcasted_iota(jnp.int32, (B, L, VOCAB), 2)
              ).astype(jnp.float32)                           # (B, L, VOCAB)
    onehot = onehot.reshape(B * L, VOCAB)
    x = jnp.dot(onehot, wemb_ref[...],
                preferred_element_type=jnp.float32)           # (B*L, E)
    x = (x.reshape(B, L, E) + pemb_ref[...][None, :, :]).reshape(B * L, E)

    # --- key-mask additive bias, hoisted once (per feedback) -----------------
    valid = ids != SRC_PAD_IDX                                # (B, L) bool
    mb = jnp.where(valid, 0.0, -1e20).astype(jnp.float32)     # (B, L)
    mask_bias = jnp.broadcast_to(mb[:, None, None, :],
                                 (B, H, 1, L)).reshape(B * H, 1, L)

    def layernorm(h, g, b):                                   # f32 math
        mu = jnp.mean(h, axis=-1, keepdims=True)
        d = h - mu
        var = jnp.mean(d * d, axis=-1, keepdims=True)
        return d * lax.rsqrt(var + LN_EPS) * g + b

    def split_heads(t):                                       # (B*L,E)->(B*H,L,D)
        parts = [t[:, h * D:(h + 1) * D].reshape(B, 1, L, D) for h in range(H)]
        return jnp.concatenate(parts, axis=1).reshape(B * H, L, D)

    def merge_heads(c):                                       # (B*H,L,D)->(B*L,E)
        c4 = c.reshape(B, H, L, D)
        parts = [c4[:, h, :, :].reshape(B * L, D) for h in range(H)]
        return jnp.concatenate(parts, axis=1)

    for l in range(NL):                                       # layers unrolled
        # --- fused QKV projection: one matmul per layer -----------------------
        qkv = jnp.dot(x.astype(bf16), wqkv_ref[l],
                      preferred_element_type=jnp.float32) + bqkv_ref[l]
        q = qkv[:, 0 * E:1 * E]
        k = qkv[:, 1 * E:2 * E]
        v = qkv[:, 2 * E:3 * E]

        qh = split_heads(q).astype(bf16)                      # (B*H, L, D)
        kh = split_heads(k).astype(bf16)
        vh = split_heads(v).astype(bf16)

        # --- batched-over-heads attention (f32 softmax) -----------------------
        scores = jnp.einsum('bld,bmd->blm', qh, kh,
                            preferred_element_type=jnp.float32) * SCALE
        scores = scores + mask_bias
        scores = scores - jnp.max(scores, axis=-1, keepdims=True)
        p = jnp.exp(scores)
        p = p * pl.reciprocal(jnp.sum(p, axis=-1, keepdims=True), approx=True)
        ctx = jnp.einsum('blm,bmd->bld', p.astype(bf16), vh,
                         preferred_element_type=jnp.float32)  # (B*H, L, D)

        # --- single concatenated head-output projection -----------------------
        attn = jnp.dot(merge_heads(ctx).astype(bf16), wo_ref[l],
                       preferred_element_type=jnp.float32) + bo_ref[l]
        x = layernorm(attn + x, ln1g_ref[l], ln1b_ref[l])

        # --- feed-forward ------------------------------------------------------
        h1 = jnp.dot(x.astype(bf16), w1_ref[l],
                     preferred_element_type=jnp.float32) + b1_ref[l]
        h1 = jnp.maximum(h1, 0.0)                             # ReLU
        ff = jnp.dot(h1.astype(bf16), w2_ref[l],
                     preferred_element_type=jnp.float32) + b2_ref[l]
        x = layernorm(ff + x, ln2g_ref[l], ln2b_ref[l])

    # --- fc_out: (B*L, E) -> (B*L, num_labels + 2) ---------------------------
    # TODO(synk): last dim T=6 stores as masked vst; pad to 128 lanes if scaled.
    out_ref[...] = jnp.dot(x.astype(bf16), wout_ref[...],
                           preferred_element_type=jnp.float32) + bout_ref[...]


def encode_and_project(params, src):
    """Fused Pallas kernel: embeddings + encoder stack + fc_out."""
    args = [
        src.astype(jnp.int32),
        params['word_emb'],                # f32 (VOCAB, E)
        params['pos_emb'][:L],             # f32 (L, E)
        params['wqkv'], params['bqkv'],
        params['wo'], params['bo'],
        params['ln1_g'], params['ln1_b'],
        params['w1'], params['b1'],
        params['w2'], params['b2'],
        params['ln2_g'], params['ln2_b'],
        params['w_out'], params['b_out'],
    ]
    vmem = pltpu.MemorySpace.VMEM
    out = pl.pallas_call(
        _fused_kernel,
        out_shape=jax.ShapeDtypeStruct((B * L, T), jnp.float32),
        in_specs=[pl.BlockSpec(memory_space=vmem) for _ in args],
        out_specs=pl.BlockSpec(memory_space=vmem),
    )(*args)
    return out.reshape(B, L, T)


# --------------------------------- CRF (JAX) ---------------------------------
def crf_decode(emissions, mask, start_t, end_t, trans):
    """Viterbi decode (torchcrf.CRF.decode semantics), returns (B, L) tags."""
    em = jnp.transpose(emissions, (1, 0, 2))        # (L, B, T)
    mk = jnp.transpose(mask, (1, 0))                # (L, B) bool
    score0 = start_t[None, :] + em[0]               # (B, T)

    def fwd(score, inp):
        em_i, mk_i = inp
        nxt = score[:, :, None] + trans[None, :, :] + em_i[:, None, :]  # (B,T,T)
        best = jnp.max(nxt, axis=1)
        idx = jnp.argmax(nxt, axis=1)               # (B, T)
        return jnp.where(mk_i[:, None], best, score), idx

    final_score, history = lax.scan(fwd, score0, (em[1:], mk[1:]))
    final_score = final_score + end_t[None, :]
    last_tag = jnp.argmax(final_score, axis=-1)     # (B,)

    def bwd(tag, inp):
        hist_i, mk_i = inp
        prev = jnp.take_along_axis(hist_i, tag[:, None], axis=1)[:, 0]
        prev = jnp.where(mk_i, prev, tag)           # carry through padding
        return prev, prev

    _, tags_rev = lax.scan(bwd, last_tag, (history[::-1], mk[1:][::-1]))
    tags = jnp.concatenate([tags_rev[::-1], last_tag[None, :]], axis=0)  # (L,B)
    return jnp.transpose(tags, (1, 0))              # (B, L)


def crf_log_likelihood(emissions, tags, mask, start_t, end_t, trans):
    """torchcrf.CRF(...) forward with reduction='token_mean'."""
    em = jnp.transpose(emissions, (1, 0, 2))        # (L, B, T)
    tg = jnp.transpose(tags, (1, 0))                # (L, B)
    mk = jnp.transpose(mask, (1, 0)).astype(jnp.float32)
    barange = jnp.arange(B)

    # numerator: score of the gold path
    score = start_t[tg[0]] + em[0, barange, tg[0]]
    def num_step(s, inp):
        em_i, tg_prev, tg_i, mk_i = inp
        return s + (trans[tg_prev, tg_i] + em_i[barange, tg_i]) * mk_i, None
    score, _ = lax.scan(num_step, score, (em[1:], tg[:-1], tg[1:], mk[1:]))
    seq_ends = jnp.sum(mask.astype(jnp.int32), axis=1) - 1
    last_tags = tags[barange, seq_ends]
    numerator = score + end_t[last_tags]

    # denominator: log partition function
    score = start_t[None, :] + em[0]
    def den_step(s, inp):
        em_i, mk_i = inp
        nxt = s[:, :, None] + trans[None, :, :] + em_i[:, None, :]
        nxt = jax.nn.logsumexp(nxt, axis=1)
        return jnp.where(mk_i[:, None] > 0, nxt, s), None
    score, _ = lax.scan(den_step, score, (em[1:], mk[1:]))
    denominator = jax.nn.logsumexp(score + end_t[None, :], axis=1)

    llh = numerator - denominator
    return jnp.sum(llh) / jnp.sum(mk)               # reduction='token_mean'


# ------------------------------ full forward ---------------------------------
def transformer_forward(params, src, trg, training):
    crf_mask = (trg != TRG_PAD_IDX)                 # make_crf_trg_mask
    # make_src_mask is fused into the kernel (computed from src ids in VMEM)
    emissions = encode_and_project(params, src)     # embeddings+encoder+fc_out
    if training:
        return crf_log_likelihood(emissions, trg, crf_mask,
                                  params['crf_start'], params['crf_end'],
                                  params['crf_trans'])
    return crf_decode(emissions, crf_mask,
                      params['crf_start'], params['crf_end'],
                      params['crf_trans'])


# ----------------------------- parameter init --------------------------------
def init_params(key):
    keys = jax.random.split(key, 12)
    f32, bf16 = jnp.float32, jnp.bfloat16

    def W(k, shape, scale=0.02, dtype=bf16):
        # MXU weights stored in bf16 (f32 accumulation in-kernel); embeddings,
        # biases, layernorm params and CRF params stay f32.
        return (scale * jax.random.normal(k, shape, dtype=f32)).astype(dtype)

    return {
        'word_emb': W(keys[0], (VOCAB, E), dtype=f32),
        'pos_emb':  W(keys[1], (MAX_SEQ_LEN, E), dtype=f32),
        'wqkv': W(keys[2], (NL, E, 3 * E)),
        'bqkv': jnp.zeros((NL, 1, 3 * E), f32),
        'wo': W(keys[3], (NL, E, E)), 'bo': jnp.zeros((NL, 1, E), f32),
        'ln1_g': jnp.ones((NL, 1, E), f32), 'ln1_b': jnp.zeros((NL, 1, E), f32),
        'w1': W(keys[4], (NL, E, FF)), 'b1': jnp.zeros((NL, 1, FF), f32),
        'w2': W(keys[5], (NL, FF, E)), 'b2': jnp.zeros((NL, 1, E), f32),
        'ln2_g': jnp.ones((NL, 1, E), f32), 'ln2_b': jnp.zeros((NL, 1, E), f32),
        'w_out': W(keys[6], (E, T)), 'b_out': jnp.zeros((1, T), f32),
        'crf_start': 0.1 * jax.random.uniform(keys[7], (T,), f32, -1.0, 1.0),
        'crf_end':   0.1 * jax.random.uniform(keys[8], (T,), f32, -1.0, 1.0),
        'crf_trans': 0.1 * jax.random.uniform(keys[9], (T, T), f32, -1.0, 1.0),
    }


# ------------------------------------ main ------------------------------------
if __name__ == "__main__":
    key = jax.random.PRNGKey(0)
    k_src, k_trg, k_par = jax.random.split(key, 3)

    # deterministic inputs with some padding at the tail of example 1
    lengths = jnp.array([L, 5], dtype=jnp.int32)
    pos = jnp.arange(L)[None, :]
    valid = pos < lengths[:, None]
    src = jnp.where(valid, jax.random.randint(k_src, (B, L), 1, VOCAB),
                    SRC_PAD_IDX).astype(jnp.int32)
    trg = jnp.where(valid, jax.random.randint(k_trg, (B, L), 1, T),
                    TRG_PAD_IDX).astype(jnp.int32)

    params = init_params(k_par)

    # jit both paths to amortize dispatch/launch overhead (workload is
    # latency/overhead bound at these shapes).
    decode_fn = jax.jit(partial(transformer_forward, training=False))
    loss_fn = jax.jit(partial(transformer_forward, training=True))

    decoded = decode_fn(params, src, trg)   # inference: CRF Viterbi decode
    loss = loss_fn(params, src, trg)        # training: CRF log-likelihood

    jax.block_until_ready((decoded, loss))
    print("KERNEL_OK")
</pallas_src>

<mosaic_0001>
module attributes {stable_mosaic.version = 11 : i64} {
  func.func @_fused_kernel(%arg0: memref<2x8xi32, #tpu.memory_space<vmem>>, %arg1: memref<50x32xf32, #tpu.memory_space<vmem>>, %arg2: memref<8x32xf32, #tpu.memory_space<vmem>>, %arg3: memref<2x32x96xbf16, #tpu.memory_space<vmem>>, %arg4: memref<2x1x96xf32, #tpu.memory_space<vmem>>, %arg5: memref<2x32x32xbf16, #tpu.memory_space<vmem>>, %arg6: memref<2x1x32xf32, #tpu.memory_space<vmem>>, %arg7: memref<2x1x32xf32, #tpu.memory_space<vmem>>, %arg8: memref<2x1x32xf32, #tpu.memory_space<vmem>>, %arg9: memref<2x32x128xbf16, #tpu.memory_space<vmem>>, %arg10: memref<2x1x128xf32, #tpu.memory_space<vmem>>, %arg11: memref<2x128x32xbf16, #tpu.memory_space<vmem>>, %arg12: memref<2x1x32xf32, #tpu.memory_space<vmem>>, %arg13: memref<2x1x32xf32, #tpu.memory_space<vmem>>, %arg14: memref<2x1x32xf32, #tpu.memory_space<vmem>>, %arg15: memref<32x6xbf16, #tpu.memory_space<vmem>>, %arg16: memref<1x6xf32, #tpu.memory_space<vmem>>, %arg17: memref<16x6xf32, #tpu.memory_space<vmem>>) attributes {dimension_semantics = [], scalar_prefetch = 0 : i64, scratch_operands = 0 : i64, tpu.core_type = #tpu.core_type<tc>} {
    %c0 = arith.constant 0 : index
    %c0_0 = arith.constant 0 : index
    %0 = vector.load %arg0[%c0, %c0_0] : memref<2x8xi32, #tpu.memory_space<vmem>>, vector<2x8xi32>
    %1 = vector.shape_cast %0 : vector<2x8xi32> to vector<2x8x1xi32>
    %2 = tpu.iota {dimensions = array<i32: 2>} : vector<2x8x50xi32>
    %3 = vector.broadcast %1 : vector<2x8x1xi32> to vector<2x8x50xi32>
    %4 = arith.cmpi eq, %3, %2 : vector<2x8x50xi32>
    %5 = arith.extui %4 : vector<2x8x50xi1> to vector<2x8x50xi32>
    %6 = arith.sitofp %5 : vector<2x8x50xi32> to vector<2x8x50xf32>
    %7 = vector.shape_cast %6 : vector<2x8x50xf32> to vector<16x50xf32>
    %c0_1 = arith.constant 0 : index
    %c0_2 = arith.constant 0 : index
    %8 = vector.load %arg1[%c0_1, %c0_2] : memref<50x32xf32, #tpu.memory_space<vmem>>, vector<50x32xf32>
    %cst = arith.constant dense<0.000000e+00> : vector<16x32xf32>
    %9 = tpu.matmul %7, %8, %cst {dimension_numbers = #tpu.dot_dimension_numbers<[1], [0], [0], [1], [0, 0, 1, 1], [], []>} : vector<16x50xf32>, vector<50x32xf32>, vector<16x32xf32> -> vector<16x32xf32>
    %10 = vector.shape_cast %9 : vector<16x32xf32> to vector<2x8x32xf32>
    %c0_3 = arith.constant 0 : index
    %c0_4 = arith.constant 0 : index
    %11 = vector.load %arg2[%c0_3, %c0_4] : memref<8x32xf32, #tpu.memory_space<vmem>>, vector<8x32xf32>
    %12 = vector.shape_cast %11 : vector<8x32xf32> to vector<1x8x32xf32>
    %13 = vector.broadcast %12 : vector<1x8x32xf32> to vector<2x8x32xf32>
    %14 = arith.addf %10, %13 : vector<2x8x32xf32>
    %15 = vector.shape_cast %14 : vector<2x8x32xf32> to vector<16x32xf32>
    %c0_i32 = arith.constant 0 : i32
    %16 = vector.broadcast %c0_i32 : i32 to vector<2x8xi32>
    %17 = arith.cmpi ne, %0, %16 : vector<2x8xi32>
    %cst_5 = arith.constant 0.000000e+00 : f32
    %cst_6 = arith.constant -1.000000e+20 : f32
    %18 = vector.broadcast %cst_5 : f32 to vector<2x8xf32>
    %19 = vector.broadcast %cst_6 : f32 to vector<2x8xf32>
    %20 = arith.select %17, %18, %19 : vector<2x8xi1>, vector<2x8xf32>
    %21 = vector.shape_cast %20 : vector<2x8xf32> to vector<2x1x1x8xf32>
    %22 = vector.shape_cast %21 : vector<2x1x1x8xf32> to vector<2x1x1x8xf32>
    %23 = vector.broadcast %22 : vector<2x1x1x8xf32> to vector<2x4x1x8xf32>
    %24 = vector.shape_cast %23 : vector<2x4x1x8xf32> to vector<8x1x8xf32>
    %25 = arith.truncf %15 : vector<16x32xf32> to vector<16x32xbf16>
    %c0_7 = arith.constant 0 : index
    %c0_8 = arith.constant 0 : index
    %c0_9 = arith.constant 0 : index
    %26 = vector.load %arg3[%c0_7, %c0_8, %c0_9] : memref<2x32x96xbf16, #tpu.memory_space<vmem>>, vector<1x32x96xbf16>
    %27 = vector.shape_cast %26 : vector<1x32x96xbf16> to vector<32x96xbf16>
    %cst_10 = arith.constant dense<0.000000e+00> : vector<16x96xf32>
    %28 = tpu.matmul %25, %27, %cst_10 {dimension_numbers = #tpu.dot_dimension_numbers<[1], [0], [0], [1], [0, 0, 1, 1], [], []>} : vector<16x32xbf16>, vector<32x96xbf16>, vector<16x96xf32> -> vector<16x96xf32>
    %c0_11 = arith.constant 0 : index
    %c0_12 = arith.constant 0 : index
    %c0_13 = arith.constant 0 : index
    %29 = vector.load %arg4[%c0_11, %c0_12, %c0_13] : memref<2x1x96xf32, #tpu.memory_space<vmem>>, vector<1x1x96xf32>
    %30 = vector.shape_cast %29 : vector<1x1x96xf32> to vector<1x96xf32>
    %31 = vector.broadcast %30 : vector<1x96xf32> to vector<16x96xf32>
    %32 = arith.addf %28, %31 : vector<16x96xf32>
    %33 = vector.extract_strided_slice %32 {offsets = [0, 0], sizes = [16, 32], strides = [1, 1]} : vector<16x96xf32> to vector<16x32xf32>
    %34 = vector.extract_strided_slice %32 {offsets = [0, 32], sizes = [16, 32], strides = [1, 1]} : vector<16x96xf32> to vector<16x32xf32>
    %35 = vector.extract_strided_slice %32 {offsets = [0, 64], sizes = [16, 32], strides = [1, 1]} : vector<16x96xf32> to vector<16x32xf32>
    %36 = vector.extract_strided_slice %33 {offsets = [0, 0], sizes = [16, 8], strides = [1, 1]} : vector<16x32xf32> to vector<16x8xf32>
    %37 = vector.shape_cast %36 : vector<16x8xf32> to vector<2x1x8x8xf32>
    %38 = vector.extract_strided_slice %33 {offsets = [0, 8], sizes = [16, 8], strides = [1, 1]} : vector<16x32xf32> to vector<16x8xf32>
    %39 = vector.shape_cast %38 : vector<16x8xf32> to vector<2x1x8x8xf32>
    %40 = vector.extract_strided_slice %33 {offsets = [0, 16], sizes = [16, 8], strides = [1, 1]} : vector<16x32xf32> to vector<16x8xf32>
    %41 = vector.shape_cast %40 : vector<16x8xf32> to vector<2x1x8x8xf32>
    %42 = vector.extract_strided_slice %33 {offsets = [0, 24], sizes = [16, 8], strides = [1, 1]} : vector<16x32xf32> to vector<16x8xf32>
    %43 = vector.shape_cast %42 : vector<16x8xf32> to vector<2x1x8x8xf32>
    %44 = tpu.concatenate %37, %39, %41, %43 in 1 : vector<2x1x8x8xf32>, vector<2x1x8x8xf32>, vector<2x1x8x8xf32>, vector<2x1x8x8xf32> -> vector<2x4x8x8xf32>
    %45 = vector.shape_cast %44 : vector<2x4x8x8xf32> to vector<8x8x8xf32>
    %46 = arith.truncf %45 : vector<8x8x8xf32> to vector<8x8x8xbf16>
    %47 = vector.extract_strided_slice %34 {offsets = [0, 0], sizes = [16, 8], strides = [1, 1]} : vector<16x32xf32> to vector<16x8xf32>
    %48 = vector.shape_cast %47 : vector<16x8xf32> to vector<2x1x8x8xf32>
    %49 = vector.extract_strided_slice %34 {offsets = [0, 8], sizes = [16, 8], strides = [1, 1]} : vector<16x32xf32> to vector<16x8xf32>
    %50 = vector.shape_cast %49 : vector<16x8xf32> to vector<2x1x8x8xf32>
    %51 = vector.extract_strided_slice %34 {offsets = [0, 16], sizes = [16, 8], strides = [1, 1]} : vector<16x32xf32> to vector<16x8xf32>
    %52 = vector.shape_cast %51 : vector<16x8xf32> to vector<2x1x8x8xf32>
    %53 = vector.extract_strided_slice %34 {offsets = [0, 24], sizes = [16, 8], strides = [1, 1]} : vector<16x32xf32> to vector<16x8xf32>
    %54 = vector.shape_cast %53 : vector<16x8xf32> to vector<2x1x8x8xf32>
    %55 = tpu.concatenate %48, %50, %52, %54 in 1 : vector<2x1x8x8xf32>, vector<2x1x8x8xf32>, vector<2x1x8x8xf32>, vector<2x1x8x8xf32> -> vector<2x4x8x8xf32>
    %56 = vector.shape_cast %55 : vector<2x4x8x8xf32> to vector<8x8x8xf32>
    %57 = arith.truncf %56 : vector<8x8x8xf32> to vector<8x8x8xbf16>
    %58 = vector.extract_strided_slice %35 {offsets = [0, 0], sizes = [16, 8], strides = [1, 1]} : vector<16x32xf32> to vector<16x8xf32>
    %59 = vector.shape_cast %58 : vector<16x8xf32> to vector<2x1x8x8xf32>
    %60 = vector.extract_strided_slice %35 {offsets = [0, 8], sizes = [16, 8], strides = [1, 1]} : vector<16x32xf32> to vector<16x8xf32>
    %61 = vector.shape_cast %60 : vector<16x8xf32> to vector<2x1x8x8xf32>
    %62 = vector.extract_strided_slice %35 {offsets = [0, 16], sizes = [16, 8], strides = [1, 1]} : vector<16x32xf32> to vector<16x8xf32>
    %63 = vector.shape_cast %62 : vector<16x8xf32> to vector<2x1x8x8xf32>
    %64 = vector.extract_strided_slice %35 {offsets = [0, 24], sizes = [16, 8], strides = [1, 1]} : vector<16x32xf32> to vector<16x8xf32>
    %65 = vector.shape_cast %64 : vector<16x8xf32> to vector<2x1x8x8xf32>
    %66 = tpu.concatenate %59, %61, %63, %65 in 1 : vector<2x1x8x8xf32>, vector<2x1x8x8xf32>, vector<2x1x8x8xf32>, vector<2x1x8x8xf32> -> vector<2x4x8x8xf32>
    %67 = vector.shape_cast %66 : vector<2x4x8x8xf32> to vector<8x8x8xf32>
    %68 = arith.truncf %67 : vector<8x8x8xf32> to vector<8x8x8xbf16>
    "tpu.trace_start"() <{level = 10 : i32, message = "bld,bmd->blm"}> : () -> ()
    %cst_14 = arith.constant dense<0.000000e+00> : vector<8x8x8xf32>
    %69 = tpu.matmul %46, %57, %cst_14 {dimension_numbers = #tpu.dot_dimension_numbers<[2], [2], [1], [1], [0, 0, 0, 1, 1, 1], [0], [0]>} : vector<8x8x8xbf16>, vector<8x8x8xbf16>, vector<8x8x8xf32> -> vector<8x8x8xf32>
    "tpu.trace_stop"() : () -> ()
    %cst_15 = arith.constant 0.353553385 : f32
    %70 = vector.broadcast %cst_15 : f32 to vector<8x8x8xf32>
    %71 = arith.mulf %69, %70 : vector<8x8x8xf32>
    %72 = vector.broadcast %24 : vector<8x1x8xf32> to vector<8x8x8xf32>
    %73 = arith.addf %71, %72 : vector<8x8x8xf32>
    %cst_16 = arith.constant dense<0xFF800000> : vector<8x8xf32>
    %74 = vector.multi_reduction <maximumf>, %73, %cst_16 [2] : vector<8x8x8xf32> to vector<8x8xf32>
    %75 = vector.shape_cast %74 : vector<8x8xf32> to vector<8x8x1xf32>
    %76 = vector.broadcast %75 : vector<8x8x1xf32> to vector<8x8x8xf32>
    %77 = arith.subf %73, %76 : vector<8x8x8xf32>
    %78 = math.exp %77 : vector<8x8x8xf32>
    %cst_17 = arith.constant dense<0.000000e+00> : vector<8x8xf32>
    %79 = vector.multi_reduction <add>, %78, %cst_17 [2] : vector<8x8x8xf32> to vector<8x8xf32>
    %80 = vector.shape_cast %79 : vector<8x8xf32> to vector<8x8x1xf32>
    %81 = tpu.reciprocal %80 {approx = true} : vector<8x8x1xf32> -> vector<8x8x1xf32>
    %82 = vector.broadcast %81 : vector<8x8x1xf32> to vector<8x8x8xf32>
    %83 = arith.mulf %78, %82 : vector<8x8x8xf32>
    %84 = arith.truncf %83 : vector<8x8x8xf32> to vector<8x8x8xbf16>
    "tpu.trace_start"() <{level = 10 : i32, message = "blm,bmd->bld"}> : () -> ()
    %cst_18 = arith.constant dense<0.000000e+00> : vector<8x8x8xf32>
    %85 = tpu.matmul %84, %68, %cst_18 {dimension_numbers = #tpu.dot_dimension_numbers<[2], [1], [1], [2], [0, 0, 0, 1, 1, 2], [0], [0]>} : vector<8x8x8xbf16>, vector<8x8x8xbf16>, vector<8x8x8xf32> -> vector<8x8x8xf32>
    "tpu.trace_stop"() : () -> ()
    %86 = vector.shape_cast %85 : vector<8x8x8xf32> to vector<2x4x8x8xf32>
    %87 = vector.extract_strided_slice %86 {offsets = [0, 0, 0, 0], sizes = [2, 1, 8, 8], strides = [1, 1, 1, 1]} : vector<2x4x8x8xf32> to vector<2x1x8x8xf32>
    %88 = vector.shape_cast %87 : vector<2x1x8x8xf32> to vector<2x8x8xf32>
    %89 = vector.shape_cast %88 : vector<2x8x8xf32> to vector<16x8xf32>
    %90 = vector.extract_strided_slice %86 {offsets = [0, 1, 0, 0], sizes = [2, 1, 8, 8], strides = [1, 1, 1, 1]} : vector<2x4x8x8xf32> to vector<2x1x8x8xf32>
    %91 = vector.shape_cast %90 : vector<2x1x8x8xf32> to vector<2x8x8xf32>
    %92 = vector.shape_cast %91 : vector<2x8x8xf32> to vector<16x8xf32>
    %93 = vector.extract_strided_slice %86 {offsets = [0, 2, 0, 0], sizes = [2, 1, 8, 8], strides = [1, 1, 1, 1]} : vector<2x4x8x8xf32> to vector<2x1x8x8xf32>
    %94 = vector.shape_cast %93 : vector<2x1x8x8xf32> to vector<2x8x8xf32>
    %95 = vector.shape_cast %94 : vector<2x8x8xf32> to vector<16x8xf32>
    %96 = vector.extract_strided_slice %86 {offsets = [0, 3, 0, 0], sizes = [2, 1, 8, 8], strides = [1, 1, 1, 1]} : vector<2x4x8x8xf32> to vector<2x1x8x8xf32>
    %97 = vector.shape_cast %96 : vector<2x1x8x8xf32> to vector<2x8x8xf32>
    %98 = vector.shape_cast %97 : vector<2x8x8xf32> to vector<16x8xf32>
    %99 = tpu.concatenate %89, %92, %95, %98 in 1 : vector<16x8xf32>, vector<16x8xf32>, vector<16x8xf32>, vector<16x8xf32> -> vector<16x32xf32>
    %100 = arith.truncf %99 : vector<16x32xf32> to vector<16x32xbf16>
    %c0_19 = arith.constant 0 : index
    %c0_20 = arith.constant 0 : index
    %c0_21 = arith.constant 0 : index
    %101 = vector.load %arg5[%c0_19, %c0_20, %c0_21] : memref<2x32x32xbf16, #tpu.memory_space<vmem>>, vector<1x32x32xbf16>
    %102 = vector.shape_cast %101 : vector<1x32x32xbf16> to vector<32x32xbf16>
    %cst_22 = arith.constant dense<0.000000e+00> : vector<16x32xf32>
    %103 = tpu.matmul %100, %102, %cst_22 {dimension_numbers = #tpu.dot_dimension_numbers<[1], [0], [0], [1], [0, 0, 1, 1], [], []>} : vector<16x32xbf16>, vector<32x32xbf16>, vector<16x32xf32> -> vector<16x32xf32>
    %c0_23 = arith.constant 0 : index
    %c0_24 = arith.constant 0 : index
    %c0_25 = arith.constant 0 : index
    %104 = vector.load %arg6[%c0_23, %c0_24, %c0_25] : memref<2x1x32xf32, #tpu.memory_space<vmem>>, vector<1x1x32xf32>
    %105 = vector.shape_cast %104 : vector<1x1x32xf32> to vector<1x32xf32>
    %106 = vector.broadcast %105 : vector<1x32xf32> to vector<16x32xf32>
    %107 = arith.addf %103, %106 : vector<16x32xf32>
    %108 = arith.addf %107, %15 : vector<16x32xf32>
    %c0_26 = arith.constant 0 : index
    %c0_27 = arith.constant 0 : index
    %c0_28 = arith.constant 0 : index
    %109 = vector.load %arg7[%c0_26, %c0_27, %c0_28] : memref<2x1x32xf32, #tpu.memory_space<vmem>>, vector<1x1x32xf32>
    %110 = vector.shape_cast %109 : vector<1x1x32xf32> to vector<1x32xf32>
    %c0_29 = arith.constant 0 : index
    %c0_30 = arith.constant 0 : index
    %c0_31 = arith.constant 0 : index
    %111 = vector.load %arg8[%c0_29, %c0_30, %c0_31] : memref<2x1x32xf32, #tpu.memory_space<vmem>>, vector<1x1x32xf32>
    %112 = vector.shape_cast %111 : vector<1x1x32xf32> to vector<1x32xf32>
    %cst_32 = arith.constant dense<0.000000e+00> : vector<16xf32>
    %113 = vector.multi_reduction <add>, %108, %cst_32 [1] : vector<16x32xf32> to vector<16xf32>
    %114 = vector.shape_cast %113 : vector<16xf32> to vector<16x1xf32>
    %cst_33 = arith.constant 3.200000e+01 : f32
    %115 = vector.broadcast %cst_33 : f32 to vector<16x1xf32>
    %116 = arith.divf %114, %115 : vector<16x1xf32>
    %117 = vector.broadcast %116 : vector<16x1xf32> to vector<16x32xf32>
    %118 = arith.subf %108, %117 : vector<16x32xf32>
    %119 = arith.mulf %118, %118 : vector<16x32xf32>
    %cst_34 = arith.constant dense<0.000000e+00> : vector<16xf32>
    %120 = vector.multi_reduction <add>, %119, %cst_34 [1] : vector<16x32xf32> to vector<16xf32>
    %121 = vector.shape_cast %120 : vector<16xf32> to vector<16x1xf32>
    %cst_35 = arith.constant 3.200000e+01 : f32
    %122 = vector.broadcast %cst_35 : f32 to vector<16x1xf32>
    %123 = arith.divf %121, %122 : vector<16x1xf32>
    %cst_36 = arith.constant 9.99999974E-6 : f32
    %124 = vector.broadcast %cst_36 : f32 to vector<16x1xf32>
    %125 = arith.addf %123, %124 : vector<16x1xf32>
    %126 = math.rsqrt %125 : vector<16x1xf32>
    %127 = vector.broadcast %126 : vector<16x1xf32> to vector<16x32xf32>
    %128 = arith.mulf %118, %127 : vector<16x32xf32>
    %129 = vector.broadcast %110 : vector<1x32xf32> to vector<16x32xf32>
    %130 = arith.mulf %128, %129 : vector<16x32xf32>
    %131 = vector.broadcast %112 : vector<1x32xf32> to vector<16x32xf32>
    %132 = arith.addf %130, %131 : vector<16x32xf32>
    %133 = arith.truncf %132 : vector<16x32xf32> to vector<16x32xbf16>
    %c0_37 = arith.constant 0 : index
    %c0_38 = arith.constant 0 : index
    %c0_39 = arith.constant 0 : index
    %134 = vector.load %arg9[%c0_37, %c0_38, %c0_39] : memref<2x32x128xbf16, #tpu.memory_space<vmem>>, vector<1x32x128xbf16>
    %135 = vector.shape_cast %134 : vector<1x32x128xbf16> to vector<32x128xbf16>
    %cst_40 = arith.constant dense<0.000000e+00> : vector<16x128xf32>
    %136 = tpu.matmul %133, %135, %cst_40 {dimension_numbers = #tpu.dot_dimension_numbers<[1], [0], [0], [1], [0, 0, 1, 1], [], []>} : vector<16x32xbf16>, vector<32x128xbf16>, vector<16x128xf32> -> vector<16x128xf32>
    %c0_41 = arith.constant 0 : index
    %c0_42 = arith.constant 0 : index
    %c0_43 = arith.constant 0 : index
    %137 = vector.load %arg10[%c0_41, %c0_42, %c0_43] : memref<2x1x128xf32, #tpu.memory_space<vmem>>, vector<1x1x128xf32>
    %138 = vector.shape_cast %137 : vector<1x1x128xf32> to vector<1x128xf32>
    %139 = vector.broadcast %138 : vector<1x128xf32> to vector<16x128xf32>
    %140 = arith.addf %136, %139 : vector<16x128xf32>
    %cst_44 = arith.constant 0.000000e+00 : f32
    %141 = vector.broadcast %cst_44 : f32 to vector<16x128xf32>
    %142 = arith.maximumf %140, %141 : vector<16x128xf32>
    %143 = arith.truncf %142 : vector<16x128xf32> to vector<16x128xbf16>
    %c0_45 = arith.constant 0 : index
    %c0_46 = arith.constant 0 : index
    %c0_47 = arith.constant 0 : index
    %144 = vector.load %arg11[%c0_45, %c0_46, %c0_47] : memref<2x128x32xbf16, #tpu.memory_space<vmem>>, vector<1x128x32xbf16>
    %145 = vector.shape_cast %144 : vector<1x128x32xbf16> to vector<128x32xbf16>
    %cst_48 = arith.constant dense<0.000000e+00> : vector<16x32xf32>
    %146 = tpu.matmul %143, %145, %cst_48 {dimension_numbers = #tpu.dot_dimension_numbers<[1], [0], [0], [1], [0, 0, 1, 1], [], []>} : vector<16x128xbf16>, vector<128x32xbf16>, vector<16x32xf32> -> vector<16x32xf32>
    %c0_49 = arith.constant 0 : index
    %c0_50 = arith.constant 0 : index
    %c0_51 = arith.constant 0 : index
    %147 = vector.load %arg12[%c0_49, %c0_50, %c0_51] : memref<2x1x32xf32, #tpu.memory_space<vmem>>, vector<1x1x32xf32>
    %148 = vector.shape_cast %147 : vector<1x1x32xf32> to vector<1x32xf32>
    %149 = vector.broadcast %148 : vector<1x32xf32> to vector<16x32xf32>
    %150 = arith.addf %146, %149 : vector<16x32xf32>
    %151 = arith.addf %150, %132 : vector<16x32xf32>
    %c0_52 = arith.constant 0 : index
    %c0_53 = arith.constant 0 : index
    %c0_54 = arith.constant 0 : index
    %152 = vector.load %arg13[%c0_52, %c0_53, %c0_54] : memref<2x1x32xf32, #tpu.memory_space<vmem>>, vector<1x1x32xf32>
    %153 = vector.shape_cast %152 : vector<1x1x32xf32> to vector<1x32xf32>
    %c0_55 = arith.constant 0 : index
    %c0_56 = arith.constant 0 : index
    %c0_57 = arith.constant 0 : index
    %154 = vector.load %arg14[%c0_55, %c0_56, %c0_57] : memref<2x1x32xf32, #tpu.memory_space<vmem>>, vector<1x1x32xf32>
    %155 = vector.shape_cast %154 : vector<1x1x32xf32> to vector<1x32xf32>
    %cst_58 = arith.constant dense<0.000000e+00> : vector<16xf32>
    %156 = vector.multi_reduction <add>, %151, %cst_58 [1] : vector<16x32xf32> to vector<16xf32>
    %157 = vector.shape_cast %156 : vector<16xf32> to vector<16x1xf32>
    %cst_59 = arith.constant 3.200000e+01 : f32
    %158 = vector.broadcast %cst_59 : f32 to vector<16x1xf32>
    %159 = arith.divf %157, %158 : vector<16x1xf32>
    %160 = vector.broadcast %159 : vector<16x1xf32> to vector<16x32xf32>
    %161 = arith.subf %151, %160 : vector<16x32xf32>
    %162 = arith.mulf %161, %161 : vector<16x32xf32>
    %cst_60 = arith.constant dense<0.000000e+00> : vector<16xf32>
    %163 = vector.multi_reduction <add>, %162, %cst_60 [1] : vector<16x32xf32> to vector<16xf32>
    %164 = vector.shape_cast %163 : vector<16xf32> to vector<16x1xf32>
    %cst_61 = arith.constant 3.200000e+01 : f32
    %165 = vector.broadcast %cst_61 : f32 to vector<16x1xf32>
    %166 = arith.divf %164, %165 : vector<16x1xf32>
    %cst_62 = arith.constant 9.99999974E-6 : f32
    %167 = vector.broadcast %cst_62 : f32 to vector<16x1xf32>
    %168 = arith.addf %166, %167 : vector<16x1xf32>
    %169 = math.rsqrt %168 : vector<16x1xf32>
    %170 = vector.broadcast %169 : vector<16x1xf32> to vector<16x32xf32>
    %171 = arith.mulf %161, %170 : vector<16x32xf32>
    %172 = vector.broadcast %153 : vector<1x32xf32> to vector<16x32xf32>
    %173 = arith.mulf %171, %172 : vector<16x32xf32>
    %174 = vector.broadcast %155 : vector<1x32xf32> to vector<16x32xf32>
    %175 = arith.addf %173, %174 : vector<16x32xf32>
    %176 = arith.truncf %175 : vector<16x32xf32> to vector<16x32xbf16>
    %c1 = arith.constant 1 : index
    %c0_63 = arith.constant 0 : index
    %c0_64 = arith.constant 0 : index
    %177 = vector.load %arg3[%c1, %c0_63, %c0_64] : memref<2x32x96xbf16, #tpu.memory_space<vmem>>, vector<1x32x96xbf16>
    %178 = vector.shape_cast %177 : vector<1x32x96xbf16> to vector<32x96xbf16>
    %cst_65 = arith.constant dense<0.000000e+00> : vector<16x96xf32>
    %179 = tpu.matmul %176, %178, %cst_65 {dimension_numbers = #tpu.dot_dimension_numbers<[1], [0], [0], [1], [0, 0, 1, 1], [], []>} : vector<16x32xbf16>, vector<32x96xbf16>, vector<16x96xf32> -> vector<16x96xf32>
    %c1_66 = arith.constant 1 : index
    %c0_67 = arith.constant 0 : index
    %c0_68 = arith.constant 0 : index
    %180 = vector.load %arg4[%c1_66, %c0_67, %c0_68] : memref<2x1x96xf32, #tpu.memory_space<vmem>>, vector<1x1x96xf32>
    %181 = vector.shape_cast %180 : vector<1x1x96xf32> to vector<1x96xf32>
    %182 = vector.broadcast %181 : vector<1x96xf32> to vector<16x96xf32>
    %183 = arith.addf %179, %182 : vector<16x96xf32>
    %184 = vector.extract_strided_slice %183 {offsets = [0, 0], sizes = [16, 32], strides = [1, 1]} : vector<16x96xf32> to vector<16x32xf32>
    %185 = vector.extract_strided_slice %183 {offsets = [0, 32], sizes = [16, 32], strides = [1, 1]} : vector<16x96xf32> to vector<16x32xf32>
    %186 = vector.extract_strided_slice %183 {offsets = [0, 64], sizes = [16, 32], strides = [1, 1]} : vector<16x96xf32> to vector<16x32xf32>
    %187 = vector.extract_strided_slice %184 {offsets = [0, 0], sizes = [16, 8], strides = [1, 1]} : vector<16x32xf32> to vector<16x8xf32>
    %188 = vector.shape_cast %187 : vector<16x8xf32> to vector<2x1x8x8xf32>
    %189 = vector.extract_strided_slice %184 {offsets = [0, 8], sizes = [16, 8], strides = [1, 1]} : vector<16x32xf32> to vector<16x8xf32>
    %190 = vector.shape_cast %189 : vector<16x8xf32> to vector<2x1x8x8xf32>
    %191 = vector.extract_strided_slice %184 {offsets = [0, 16], sizes = [16, 8], strides = [1, 1]} : vector<16x32xf32> to vector<16x8xf32>
    %192 = vector.shape_cast %191 : vector<16x8xf32> to vector<2x1x8x8xf32>
    %193 = vector.extract_strided_slice %184 {offsets = [0, 24], sizes = [16, 8], strides = [1, 1]} : vector<16x32xf32> to vector<16x8xf32>
    %194 = vector.shape_cast %193 : vector<16x8xf32> to vector<2x1x8x8xf32>
    %195 = tpu.concatenate %188, %190, %192, %194 in 1 : vector<2x1x8x8xf32>, vector<2x1x8x8xf32>, vector<2x1x8x8xf32>, vector<2x1x8x8xf32> -> vector<2x4x8x8xf32>
    %196 = vector.shape_cast %195 : vector<2x4x8x8xf32> to vector<8x8x8xf32>
    %197 = arith.truncf %196 : vector<8x8x8xf32> to vector<8x8x8xbf16>
    %198 = vector.extract_strided_slice %185 {offsets = [0, 0], sizes = [16, 8], strides = [1, 1]} : vector<16x32xf32> to vector<16x8xf32>
    %199 = vector.shape_cast %198 : vector<16x8xf32> to vector<2x1x8x8xf32>
    %200 = vector.extract_strided_slice %185 {offsets = [0, 8], sizes = [16, 8], strides = [1, 1]} : vector<16x32xf32> to vector<16x8xf32>
    %201 = vector.shape_cast %200 : vector<16x8xf32> to vector<2x1x8x8xf32>
    %202 = vector.extract_strided_slice %185 {offsets = [0, 16], sizes = [16, 8], strides = [1, 1]} : vector<16x32xf32> to vector<16x8xf32>
    %203 = vector.shape_cast %202 : vector<16x8xf32> to vector<2x1x8x8xf32>
    %204 = vector.extract_strided_slice %185 {offsets = [0, 24], sizes = [16, 8], strides = [1, 1]} : vector<16x32xf32> to vector<16x8xf32>
    %205 = vector.shape_cast %204 : vector<16x8xf32> to vector<2x1x8x8xf32>
    %206 = tpu.concatenate %199, %201, %203, %205 in 1 : vector<2x1x8x8xf32>, vector<2x1x8x8xf32>, vector<2x1x8x8xf32>, vector<2x1x8x8xf32> -> vector<2x4x8x8xf32>
    %207 = vector.shape_cast %206 : vector<2x4x8x8xf32> to vector<8x8x8xf32>
    %208 = arith.truncf %207 : vector<8x8x8xf32> to vector<8x8x8xbf16>
    %209 = vector.extract_strided_slice %186 {offsets = [0, 0], sizes = [16, 8], strides = [1, 1]} : vector<16x32xf32> to vector<16x8xf32>
    %210 = vector.shape_cast %209 : vector<16x8xf32> to vector<2x1x8x8xf32>
    %211 = vector.extract_strided_slice %186 {offsets = [0, 8], sizes = [16, 8], strides = [1, 1]} : vector<16x32xf32> to vector<16x8xf32>
    %212 = vector.shape_cast %211 : vector<16x8xf32> to vector<2x1x8x8xf32>
    %213 = vector.extract_strided_slice %186 {offsets = [0, 16], sizes = [16, 8], strides = [1, 1]} : vector<16x32xf32> to vector<16x8xf32>
    %214 = vector.shape_cast %213 : vector<16x8xf32> to vector<2x1x8x8xf32>
    %215 = vector.extract_strided_slice %186 {offsets = [0, 24], sizes = [16, 8], strides = [1, 1]} : vector<16x32xf32> to vector<16x8xf32>
    %216 = vector.shape_cast %215 : vector<16x8xf32> to vector<2x1x8x8xf32>
    %217 = tpu.concatenate %210, %212, %214, %216 in 1 : vector<2x1x8x8xf32>, vector<2x1x8x8xf32>, vector<2x1x8x8xf32>, vector<2x1x8x8xf32> -> vector<2x4x8x8xf32>
    %218 = vector.shape_cast %217 : vector<2x4x8x8xf32> to vector<8x8x8xf32>
    %219 = arith.truncf %218 : vector<8x8x8xf32> to vector<8x8x8xbf16>
    "tpu.trace_start"() <{level = 10 : i32, message = "bld,bmd->blm"}> : () -> ()
    %cst_69 = arith.constant dense<0.000000e+00> : vector<8x8x8xf32>
    %220 = tpu.matmul %197, %208, %cst_69 {dimension_numbers = #tpu.dot_dimension_numbers<[2], [2], [1], [1], [0, 0, 0, 1, 1, 1], [0], [0]>} : vector<8x8x8xbf16>, vector<8x8x8xbf16>, vector<8x8x8xf32> -> vector<8x8x8xf32>
    "tpu.trace_stop"() : () -> ()
    %cst_70 = arith.constant 0.353553385 : f32
    %221 = vector.broadcast %cst_70 : f32 to vector<8x8x8xf32>
    %222 = arith.mulf %220, %221 : vector<8x8x8xf32>
    %223 = vector.broadcast %24 : vector<8x1x8xf32> to vector<8x8x8xf32>
    %224 = arith.addf %222, %223 : vector<8x8x8xf32>
    %cst_71 = arith.constant dense<0xFF800000> : vector<8x8xf32>
    %225 = vector.multi_reduction <maximumf>, %224, %cst_71 [2] : vector<8x8x8xf32> to vector<8x8xf32>
    %226 = vector.shape_cast %225 : vector<8x8xf32> to vector<8x8x1xf32>
    %227 = vector.broadcast %226 : vector<8x8x1xf32> to vector<8x8x8xf32>
    %228 = arith.subf %224, %227 : vector<8x8x8xf32>
    %229 = math.exp %228 : vector<8x8x8xf32>
    %cst_72 = arith.constant dense<0.000000e+00> : vector<8x8xf32>
    %230 = vector.multi_reduction <add>, %229, %cst_72 [2] : vector<8x8x8xf32> to vector<8x8xf32>
    %231 = vector.shape_cast %230 : vector<8x8xf32> to vector<8x8x1xf32>
    %232 = tpu.reciprocal %231 {approx = true} : vector<8x8x1xf32> -> vector<8x8x1xf32>
    %233 = vector.broadcast %232 : vector<8x8x1xf32> to vector<8x8x8xf32>
    %234 = arith.mulf %229, %233 : vector<8x8x8xf32>
    %235 = arith.truncf %234 : vector<8x8x8xf32> to vector<8x8x8xbf16>
    "tpu.trace_start"() <{level = 10 : i32, message = "blm,bmd->bld"}> : () -> ()
    %cst_73 = arith.constant dense<0.000000e+00> : vector<8x8x8xf32>
    %236 = tpu.matmul %235, %219, %cst_73 {dimension_numbers = #tpu.dot_dimension_numbers<[2], [1], [1], [2], [0, 0, 0, 1, 1, 2], [0], [0]>} : vector<8x8x8xbf16>, vector<8x8x8xbf16>, vector<8x8x8xf32> -> vector<8x8x8xf32>
    "tpu.trace_stop"() : () -> ()
    %237 = vector.shape_cast %236 : vector<8x8x8xf32> to vector<2x4x8x8xf32>
    %238 = vector.extract_strided_slice %237 {offsets = [0, 0, 0, 0], sizes = [2, 1, 8, 8], strides = [1, 1, 1, 1]} : vector<2x4x8x8xf32> to vector<2x1x8x8xf32>
    %239 = vector.shape_cast %238 : vector<2x1x8x8xf32> to vector<2x8x8xf32>
    %240 = vector.shape_cast %239 : vector<2x8x8xf32> to vector<16x8xf32>
    %241 = vector.extract_strided_slice %237 {offsets = [0, 1, 0, 0], sizes = [2, 1, 8, 8], strides = [1, 1, 1, 1]} : vector<2x4x8x8xf32> to vector<2x1x8x8xf32>
    %242 = vector.shape_cast %241 : vector<2x1x8x8xf32> to vector<2x8x8xf32>
    %243 = vector.shape_cast %242 : vector<2x8x8xf32> to vector<16x8xf32>
    %244 = vector.extract_strided_slice %237 {offsets = [0, 2, 0, 0], sizes = [2, 1, 8, 8], strides = [1, 1, 1, 1]} : vector<2x4x8x8xf32> to vector<2x1x8x8xf32>
    %245 = vector.shape_cast %244 : vector<2x1x8x8xf32> to vector<2x8x8xf32>
    %246 = vector.shape_cast %245 : vector<2x8x8xf32> to vector<16x8xf32>
    %247 = vector.extract_strided_slice %237 {offsets = [0, 3, 0, 0], sizes = [2, 1, 8, 8], strides = [1, 1, 1, 1]} : vector<2x4x8x8xf32> to vector<2x1x8x8xf32>
    %248 = vector.shape_cast %247 : vector<2x1x8x8xf32> to vector<2x8x8xf32>
    %249 = vector.shape_cast %248 : vector<2x8x8xf32> to vector<16x8xf32>
    %250 = tpu.concatenate %240, %243, %246, %249 in 1 : vector<16x8xf32>, vector<16x8xf32>, vector<16x8xf32>, vector<16x8xf32> -> vector<16x32xf32>
    %251 = arith.truncf %250 : vector<16x32xf32> to vector<16x32xbf16>
    %c1_74 = arith.constant 1 : index
    %c0_75 = arith.constant 0 : index
    %c0_76 = arith.constant 0 : index
    %252 = vector.load %arg5[%c1_74, %c0_75, %c0_76] : memref<2x32x32xbf16, #tpu.memory_space<vmem>>, vector<1x32x32xbf16>
    %253 = vector.shape_cast %252 : vector<1x32x32xbf16> to vector<32x32xbf16>
    %cst_77 = arith.constant dense<0.000000e+00> : vector<16x32xf32>
    %254 = tpu.matmul %251, %253, %cst_77 {dimension_numbers = #tpu.dot_dimension_numbers<[1], [0], [0], [1], [0, 0, 1, 1], [], []>} : vector<16x32xbf16>, vector<32x32xbf16>, vector<16x32xf32> -> vector<16x32xf32>
    %c1_78 = arith.constant 1 : index
    %c0_79 = arith.constant 0 : index
    %c0_80 = arith.constant 0 : index
    %255 = vector.load %arg6[%c1_78, %c0_79, %c0_80] : memref<2x1x32xf32, #tpu.memory_space<vmem>>, vector<1x1x32xf32>
    %256 = vector.shape_cast %255 : vector<1x1x32xf32> to vector<1x32xf32>
    %257 = vector.broadcast %256 : vector<1x32xf32> to vector<16x32xf32>
    %258 = arith.addf %254, %257 : vector<16x32xf32>
    %259 = arith.addf %258, %175 : vector<16x32xf32>
    %c1_81 = arith.constant 1 : index
    %c0_82 = arith.constant 0 : index
    %c0_83 = arith.constant 0 : index
    %260 = vector.load %arg7[%c1_81, %c0_82, %c0_83] : memref<2x1x32xf32, #tpu.memory_space<vmem>>, vector<1x1x32xf32>
    %261 = vector.shape_cast %260 : vector<1x1x32xf32> to vector<1x32xf32>
    %c1_84 = arith.constant 1 : index
    %c0_85 = arith.constant 0 : index
    %c0_86 = arith.constant 0 : index
    %262 = vector.load %arg8[%c1_84, %c0_85, %c0_86] : memref<2x1x32xf32, #tpu.memory_space<vmem>>, vector<1x1x32xf32>
    %263 = vector.shape_cast %262 : vector<1x1x32xf32> to vector<1x32xf32>
    %cst_87 = arith.constant dense<0.000000e+00> : vector<16xf32>
    %264 = vector.multi_reduction <add>, %259, %cst_87 [1] : vector<16x32xf32> to vector<16xf32>
    %265 = vector.shape_cast %264 : vector<16xf32> to vector<16x1xf32>
    %cst_88 = arith.constant 3.200000e+01 : f32
    %266 = vector.broadcast %cst_88 : f32 to vector<16x1xf32>
    %267 = arith.divf %265, %266 : vector<16x1xf32>
    %268 = vector.broadcast %267 : vector<16x1xf32> to vector<16x32xf32>
    %269 = arith.subf %259, %268 : vector<16x32xf32>
    %270 = arith.mulf %269, %269 : vector<16x32xf32>
    %cst_89 = arith.constant dense<0.000000e+00> : vector<16xf32>
    %271 = vector.multi_reduction <add>, %270, %cst_89 [1] : vector<16x32xf32> to vector<16xf32>
    %272 = vector.shape_cast %271 : vector<16xf32> to vector<16x1xf32>
    %cst_90 = arith.constant 3.200000e+01 : f32
    %273 = vector.broadcast %cst_90 : f32 to vector<16x1xf32>
    %274 = arith.divf %272, %273 : vector<16x1xf32>
    %cst_91 = arith.constant 9.99999974E-6 : f32
    %275 = vector.broadcast %cst_91 : f32 to vector<16x1xf32>
    %276 = arith.addf %274, %275 : vector<16x1xf32>
    %277 = math.rsqrt %276 : vector<16x1xf32>
    %278 = vector.broadcast %277 : vector<16x1xf32> to vector<16x32xf32>
    %279 = arith.mulf %269, %278 : vector<16x32xf32>
    %280 = vector.broadcast %261 : vector<1x32xf32> to vector<16x32xf32>
    %281 = arith.mulf %279, %280 : vector<16x32xf32>
    %282 = vector.broadcast %263 : vector<1x32xf32> to vector<16x32xf32>
    %283 = arith.addf %281, %282 : vector<16x32xf32>
    %284 = arith.truncf %283 : vector<16x32xf32> to vector<16x32xbf16>
    %c1_92 = arith.constant 1 : index
    %c0_93 = arith.constant 0 : index
    %c0_94 = arith.constant 0 : index
    %285 = vector.load %arg9[%c1_92, %c0_93, %c0_94] : memref<2x32x128xbf16, #tpu.memory_space<vmem>>, vector<1x32x128xbf16>
    %286 = vector.shape_cast %285 : vector<1x32x128xbf16> to vector<32x128xbf16>
    %cst_95 = arith.constant dense<0.000000e+00> : vector<16x128xf32>
    %287 = tpu.matmul %284, %286, %cst_95 {dimension_numbers = #tpu.dot_dimension_numbers<[1], [0], [0], [1], [0, 0, 1, 1], [], []>} : vector<16x32xbf16>, vector<32x128xbf16>, vector<16x128xf32> -> vector<16x128xf32>
    %c1_96 = arith.constant 1 : index
    %c0_97 = arith.constant 0 : index
    %c0_98 = arith.constant 0 : index
    %288 = vector.load %arg10[%c1_96, %c0_97, %c0_98] : memref<2x1x128xf32, #tpu.memory_space<vmem>>, vector<1x1x128xf32>
    %289 = vector.shape_cast %288 : vector<1x1x128xf32> to vector<1x128xf32>
    %290 = vector.broadcast %289 : vector<1x128xf32> to vector<16x128xf32>
    %291 = arith.addf %287, %290 : vector<16x128xf32>
    %cst_99 = arith.constant 0.000000e+00 : f32
    %292 = vector.broadcast %cst_99 : f32 to vector<16x128xf32>
    %293 = arith.maximumf %291, %292 : vector<16x128xf32>
    %294 = arith.truncf %293 : vector<16x128xf32> to vector<16x128xbf16>
    %c1_100 = arith.constant 1 : index
    %c0_101 = arith.constant 0 : index
    %c0_102 = arith.constant 0 : index
    %295 = vector.load %arg11[%c1_100, %c0_101, %c0_102] : memref<2x128x32xbf16, #tpu.memory_space<vmem>>, vector<1x128x32xbf16>
    %296 = vector.shape_cast %295 : vector<1x128x32xbf16> to vector<128x32xbf16>
    %cst_103 = arith.constant dense<0.000000e+00> : vector<16x32xf32>
    %297 = tpu.matmul %294, %296, %cst_103 {dimension_numbers = #tpu.dot_dimension_numbers<[1], [0], [0], [1], [0, 0, 1, 1], [], []>} : vector<16x128xbf16>, vector<128x32xbf16>, vector<16x32xf32> -> vector<16x32xf32>
    %c1_104 = arith.constant 1 : index
    %c0_105 = arith.constant 0 : index
    %c0_106 = arith.constant 0 : index
    %298 = vector.load %arg12[%c1_104, %c0_105, %c0_106] : memref<2x1x32xf32, #tpu.memory_space<vmem>>, vector<1x1x32xf32>
    %299 = vector.shape_cast %298 : vector<1x1x32xf32> to vector<1x32xf32>
    %300 = vector.broadcast %299 : vector<1x32xf32> to vector<16x32xf32>
    %301 = arith.addf %297, %300 : vector<16x32xf32>
    %302 = arith.addf %301, %283 : vector<16x32xf32>
    %c1_107 = arith.constant 1 : index
    %c0_108 = arith.constant 0 : index
    %c0_109 = arith.constant 0 : index
    %303 = vector.load %arg13[%c1_107, %c0_108, %c0_109] : memref<2x1x32xf32, #tpu.memory_space<vmem>>, vector<1x1x32xf32>
    %304 = vector.shape_cast %303 : vector<1x1x32xf32> to vector<1x32xf32>
    %c1_110 = arith.constant 1 : index
    %c0_111 = arith.constant 0 : index
    %c0_112 = arith.constant 0 : index
    %305 = vector.load %arg14[%c1_110, %c0_111, %c0_112] : memref<2x1x32xf32, #tpu.memory_space<vmem>>, vector<1x1x32xf32>
    %306 = vector.shape_cast %305 : vector<1x1x32xf32> to vector<1x32xf32>
    %cst_113 = arith.constant dense<0.000000e+00> : vector<16xf32>
    %307 = vector.multi_reduction <add>, %302, %cst_113 [1] : vector<16x32xf32> to vector<16xf32>
    %308 = vector.shape_cast %307 : vector<16xf32> to vector<16x1xf32>
    %cst_114 = arith.constant 3.200000e+01 : f32
    %309 = vector.broadcast %cst_114 : f32 to vector<16x1xf32>
    %310 = arith.divf %308, %309 : vector<16x1xf32>
    %311 = vector.broadcast %310 : vector<16x1xf32> to vector<16x32xf32>
    %312 = arith.subf %302, %311 : vector<16x32xf32>
    %313 = arith.mulf %312, %312 : vector<16x32xf32>
    %cst_115 = arith.constant dense<0.000000e+00> : vector<16xf32>
    %314 = vector.multi_reduction <add>, %313, %cst_115 [1] : vector<16x32xf32> to vector<16xf32>
    %315 = vector.shape_cast %314 : vector<16xf32> to vector<16x1xf32>
    %cst_116 = arith.constant 3.200000e+01 : f32
    %316 = vector.broadcast %cst_116 : f32 to vector<16x1xf32>
    %317 = arith.divf %315, %316 : vector<16x1xf32>
    %cst_117 = arith.constant 9.99999974E-6 : f32
    %318 = vector.broadcast %cst_117 : f32 to vector<16x1xf32>
    %319 = arith.addf %317, %318 : vector<16x1xf32>
    %320 = math.rsqrt %319 : vector<16x1xf32>
    %321 = vector.broadcast %320 : vector<16x1xf32> to vector<16x32xf32>
    %322 = arith.mulf %312, %321 : vector<16x32xf32>
    %323 = vector.broadcast %304 : vector<1x32xf32> to vector<16x32xf32>
    %324 = arith.mulf %322, %323 : vector<16x32xf32>
    %325 = vector.broadcast %306 : vector<1x32xf32> to vector<16x32xf32>
    %326 = arith.addf %324, %325 : vector<16x32xf32>
    %327 = arith.truncf %326 : vector<16x32xf32> to vector<16x32xbf16>
    %c0_118 = arith.constant 0 : index
    %c0_119 = arith.constant 0 : index
    %328 = vector.load %arg15[%c0_118, %c0_119] : memref<32x6xbf16, #tpu.memory_space<vmem>>, vector<32x6xbf16>
    %cst_120 = arith.constant dense<0.000000e+00> : vector<16x6xf32>
    %329 = tpu.matmul %327, %328, %cst_120 {dimension_numbers = #tpu.dot_dimension_numbers<[1], [0], [0], [1], [0, 0, 1, 1], [], []>} : vector<16x32xbf16>, vector<32x6xbf16>, vector<16x6xf32> -> vector<16x6xf32>
    %c0_121 = arith.constant 0 : index
    %c0_122 = arith.constant 0 : index
    %330 = vector.load %arg16[%c0_121, %c0_122] : memref<1x6xf32, #tpu.memory_space<vmem>>, vector<1x6xf32>
    %331 = vector.broadcast %330 : vector<1x6xf32> to vector<16x6xf32>
    %332 = arith.addf %329, %331 : vector<16x6xf32>
    %c0_123 = arith.constant 0 : index
    %c0_124 = arith.constant 0 : index
    %333 = vector.load %arg17[%c0_123, %c0_124] : memref<16x6xf32, #tpu.memory_space<vmem>>, vector<16x6xf32>
    tpu.vector_store %arg17[%c0_123, %c0_124], %332 {strides = array<i32>} : memref<16x6xf32, #tpu.memory_space<vmem>>, vector<16x6xf32>,
    return
  }
}

</mosaic_0001>

<bundles_post_ra>
// kernel: custom-call.2
= control target key start
LH: loop header
LB: loop body
LE: loop exit
PB: predicated region body
PF: predicated region fallthrough
CT: control target
= control target key end

     0   :  { %s6_s0 = inlined_call_operand.vmem [shape: s32[7,2,6], index: 0, kind: output, shape index: {}]  }

// kernel: custom-call.3
= control target key start
LH: loop header
LB: loop body
LE: loop exit
PB: predicated region body
PF: predicated region fallthrough
CT: control target
= control target key end

     0   :  { %s6_s0 = inlined_call_operand.vmem [shape: s32[7,2], index: 0, kind: output, shape index: {}]  }

// kernel: transformer_forward.1
= control target key start
LH: loop header
LB: loop body
LE: loop exit
PB: predicated region body
PF: predicated region fallthrough
CT: control target
= control target key end

     0   :  { %v58_v0 = vlaneseq  ;;  %v3726_v2 = vmov 1966171168   ;;  %v3727_v6 = vmov 0.0   ;;  %v3728_v16 = vmov -1e+20   ;;  %s3731_s20 = smov 120   ;;  %s4532_s0 = inlined_call_operand.vmem [shape: s32[2,8], index: 0, kind: input, shape index: {}]   ;;  %s4533_s1 = inlined_call_operand.vmem [shape: f32[50,32], index: 1, kind: input, shape index: {}]   ;;  %s4534_s3 = inlined_call_operand.vmem [shape: bf16[2,32,96], index: 3, kind: input, shape index: {}]   ;;  %s4535_s2 = inlined_call_operand.vmem [shape: f32[8,32], index: 2, kind: input, shape index: {}]   ;;  %s4536_s4 = inlined_call_operand.vmem [shape: f32[2,1,96], index: 4, kind: input, shape index: {}]   ;;  %s4537_s5 = inlined_call_operand.vmem [shape: bf16[2,32,32], index: 5, kind: input, shape index: {}]   ;;  %s4538_s6 = inlined_call_operand.vmem [shape: f32[2,1,32], index: 6, kind: input, shape index: {}]   ;;  %s4539_s9 = inlined_call_operand.vmem [shape: bf16[2,32,128], index: 9, kind: input, shape index: {}]   ;;  %s4540_s11 = inlined_call_operand.vmem [shape: bf16[2,128,32], index: 11, kind: input, shape index: {}]   ;;  %s4541_s7 = inlined_call_operand.vmem [shape: f32[2,1,32], index: 7, kind: input, shape index: {}]   ;;  %s4542_s8 = inlined_call_operand.vmem [shape: f32[2,1,32], index: 8, kind: input, shape index: {}]   ;;  %s4543_s10 = inlined_call_operand.vmem [shape: f32[2,1,128], index: 10, kind: input, shape index: {}]   ;;  %s4544_s12 = inlined_call_operand.vmem [shape: f32[2,1,32], index: 12, kind: input, shape index: {}]   ;;  %s4545_s13 = inlined_call_operand.vmem [shape: f32[2,1,32], index: 13, kind: input, shape index: {}]   ;;  %s4546_s14 = inlined_call_operand.vmem [shape: f32[2,1,32], index: 14, kind: input, shape index: {}]   ;;  %s4547_s15 = inlined_call_operand.vmem [shape: bf16[32,6], index: 15, kind: input, shape index: {}]   ;;  %s4548_s16 = inlined_call_operand.vmem [shape: f32[1,6], index: 16, kind: input, shape index: {}]   ;;  %s4549_s17 = inlined_call_operand.vmem [shape: f32[16,6], index: 17, kind: output, shape index: {}]  }
   0x1   :  { %4551 = sst [smem:[#allocation2_spill]] %s4532_s0  ;;  %v180_v3 = vunpack.c.l.s4 %v3726_v2  ;;  %3288 = vmatprep.subr.bf16.mxu0 %v3727_v6  ;;  %vm94_vm1 = vcmask 1041408   ;;  %vm87_vm2 = vcmask 408576   ;;  %v3616_v34 = vld [vmem:[%s4534_s3] sm:$0xff]   ;;  %v3617_v36 = vld [vmem:[%s4534_s3 + $0x8] sm:$0xff]   ;;  %vm3729_vm5 = vmmov 0  }
   0x2   :  { %4552 = sst [smem:[#allocation3_spill]] %s4533_s1  ;;  %s4553_s26 = sld [smem:[#allocation2_spill]]  ;;  %v59_v7 = vshrl.u32 %v58_v0, 7  ;;  %v73_v30 = vand.u32 127, %v58_v0  ;;  %3290 = vmatprep.mubr.msk.bf16.mxu0 %vm3729_vm5, %v3727_v6  ;;  %v173_v37 = vld [vmem:[%s4535_s2] sm:$0xff]  ;;  %vm225_vm6 = vcmask 261120  }
   0x3   :  { %s4554_s29 = sld [smem:[#allocation3_spill]]  ;;  %v181_v11 = vunpack.c.0.s8 %v180_v3  ;;  %v3023_v43 = vld [vmem:[%s4536_s4] ss:$0 sm:$0xff]  ;;  %s3730_s2 = smov 104   ;;  %vm301_vm7 = vcmask 64512   ;;  %vm818_vm8 = vcmask 1043456  }
   0x4   :  { %v60_v15 = vsub.s32 0, %v59_v7  ;;  %v67_v18 = vsub.s32 1, %v59_v7  ;;  %s3732_s21 = smov 112   ;;  %s3733_s22 = smov 96   ;;  %vm1224_vm9 = vcmask 130048   ;;  %vm1227_vm10 = vcmask 195584  }
   0x5   :  { %v184_v19 = vsub.s32 %v181_v11, %v59_v7  ;;  %s3734_s23 = smov 64   ;;  %s3735_s28 = smov 8   ;;  %vm3011_vm11 = vcmask 48128  }
   0x6   :  { %s3737_s0 = smov 24  }
   0x8   :  { %v57_v1 = vld [vmem:[%s4553_s26] sm:$0x3] }
   0x9   :  { %v80_v4 = vld [vmem:[%s4554_s29] sm:$0xff]  ;;  %v81_v5 = vld [vmem:[%s4554_s29 + $0x8] sm:$0xff]  ;;  %vm176_vm0 = vcmp.ne.s32.totalorder %v57_v1, 0  ;;  %v82_v9 = vld [vmem:[%s4554_s29 + $0x10] sm:$0xff]  ;;  %v61_v20 = vrot.slane %v57_v1, %v60_v15  ;;  %v68_v23 = vrot.slane %v57_v1, %v67_v18 }
   0xa   :  { %v3562_v8 = vpack.c.bf16 %v81_v5, %v80_v4  ;;  %v83_v10 = vld [vmem:[%s4554_s29 + $0x18] sm:$0xff]  ;;  %v84_v13 = vld [vmem:[%s4554_s29 + $0x20] sm:$0xff]  ;;  %v85_v14 = vld [vmem:[%s4554_s29 + $0x28] sm:$0xff]  ;;  %v177_v17 = vsel %vm176_vm0, 0.0, %v3728_v16 }
   0xb   :  { %v3566_v12 = vpack.c.bf16 %v83_v10, %v82_v9  ;;  %v3570_v21 = vpack.c.bf16 %v85_v14, %v84_v13  ;;  %v185_v22 = vrot.slane %v177_v17, %v184_v19  ;;  %63 = vbcast.lane.b32.xlu0 %v61_v20, 256  ;;  %v86_v28 = vld [vmem:[%s4554_s29 + $0x30] sm:$0x3]  ;;  %s3736_s29 = smov 16  }
   0xc   :  { %3563 = vmatprep.subr.bf16.mxu1 %v3562_v8 }
   0xd   :  { %3565 = vmatpush3.bf16.msra.mxu1 %v3562_v8  ;;  %v186_v24 = vcombine.high %v185_v22, %v185_v22  ;;  %v193_v25 = vrot.slane %v185_v22, %v184_v19 }
   0xe   :  { %3567 = vmatprep.subr.bf16.mxu1 %v3566_v12 }
   0xf   :  { %v200_v26 = vrot.slane %v186_v24, %v184_v19  ;;  %v3850_v27 = vrot.slane %v193_v25, %v60_v15  ;;  %70 = vbcast.lane.b32.xlu0 %v68_v23, 256 }
  0x11   :  { %3569 = vmatpush3.bf16.msra.mxu1 %v3566_v12  ;;  %v3855_v29 = vrot.slane %v200_v26, %v60_v15 }
  0x12   :  { %3571 = vmatprep.subr.bf16.mxu1 %v3570_v21 }
  0x15   :  { %3573 = vmatpush3.bf16.msra.mxu1 %v3570_v21 }
  0x16   :  { %3269 = vmatprep.subr.msk.mxu1 %vm94_vm1, %v86_v28 }
  0x19   :  { %3270 = vmatpush3.msk.msra.mxu1 %vm94_vm1, %v86_v28 }
  0x1a   :  { %3274 = vmatprep.subr.bf16.mxu1 %v3727_v6 }
  0x7d   :  { %v64_v31 = vpop.permute.xlu0 %63 }
  0x7e   :  { %vm74_vm3 = vcmp.eq.s32.totalorder %v64_v31, %v73_v30 }
  0x7f   :  { %v3018_v32 = vsel %vm74_vm3, 1.0, %v3727_v6 }
  0x80   :  { %3271 = vmatprep.mubr.msk.f32.mxu1 %vm87_vm2, %v3018_v32 }
  0x81   :  { %v71_v33 = vpop.permute.xlu0 %70 }
  0x82   :  { %vm75_vm4 = vcmp.eq.s32.totalorder %v71_v33, %v73_v30 }
  0x83   :  { %v3019_v35 = vsel %vm75_vm4, 1.0, %v3727_v6 }
  0x84   :  { %3272 = vmatmul.mubr.msk.f32.vlgmr.msra.gmra.mrb[0].mxu1 %vm87_vm2, %v3019_v35 }
  0x85   :  { %3275 = vmatpush3.bf16.msra.mxu1 %v3616_v34  ;;  %3278 = vmatprep.mubr.msk.bf16.mxu1 %vm3729_vm5, %v3727_v6 }
  0x86   :  { %3276 = vmatprep.subr.bf16.mxu1 %v3727_v6 }
  0x89   :  { %3277 = vmatpush3.bf16.msra.mxu1 %v3617_v36 }
  0x8a   :  { %3282 = vmatprep.subr.bf16.mxu1 %v3727_v6 }
 0x157   :  { %v3273_v38 = vpop.f32.mrb[0].mxu1 }
 0x158   :  { %v3875_v39 = vadd.f32 %v3273_v38, %v173_v37  ;;  %v164_v40 = vpop.f32.mrb[1].mxu1 }
 0x159   :  { %v3877_v41 = vadd.f32 %v173_v37, %v164_v40 }
 0x15b   :  { %v201_v42 = vpack.c.bf16 %v3875_v39, %v3877_v41 }
 0x15d   :  { %3279 = vmatmul.mubr.msk.bf16.vlgmr.msra.gmra.mrb[4].mxu1 %vm225_vm6, %v201_v42 }
 0x15e   :  { %3284 = vmatprep.mubr.msk.bf16.mxu1 %vm3729_vm5, %v3727_v6 }
 0x230   :  { %v263_v44 = vpop.f32.mrb[4].mxu1 }
 0x231   :  { %v264_v45 = vadd.f32 %v3023_v43, %v263_v44  ;;  %v3280_v46 = vpop.f32.mrb[5].mxu1 }
 0x232   :  { %v266_v47 = vpop.f32.mrb[6].mxu1 }
 0x233   :  { %284 = vrot.lane.b32.xlu0 %v264_v45, %s3730_s2  ;;  %272 = vrot.lane.b32.xlu1 %v264_v45, %s3731_s20  ;;  %v3281_v48 = vpop.f32.mrb[7].mxu1  ;;  %v267_v49 = vadd.f32 %v3023_v43, %v266_v47  ;;  %v290_v50 = vpack.c.bf16 %v264_v45, %v264_v45 }
 0x235   :  { %v3909_v62 = vpack.c.bf16 %v267_v49, %v267_v49 }
 0x237   :  { %278 = vrot.lane.b32.xlu1 %v264_v45, %s3732_s21  ;;  %280 = vrot.lane.b32.xlu0 %v267_v49, %s3732_s21 }
 0x23b   :  { %299 = vrot.lane.b32.xlu0 %v290_v50, %s3733_s22  ;;  %274 = vrot.lane.b32.xlu1 %v267_v49, %s3731_s20 }
 0x23f   :  { %286 = vrot.lane.b32.xlu1 %v267_v49, %s3730_s2 }
 0x2a5   :  { %v285_v51 = vpop.permute.xlu0 %284  ;;  %v273_v52 = vpop.permute.xlu1 %272 }
 0x2a6   :  { %v3894_v53 = vpack.c.bf16 %v273_v52, %v273_v52  ;;  %v3898_v56 = vpack.c.bf16 %v285_v51, %v285_v51 }
 0x2a8   :  { %349 = vrot.lane.b32.xlu1 %v3894_v53, %s3733_s22 }
 0x2a9   :  { %v279_v54 = vpop.permute.xlu1 %278  ;;  %v281_v55 = vpop.permute.xlu0 %280 }
 0x2aa   :  { %v3900_v57 = vpack.c.bf16 %v279_v54, %v279_v54  ;;  %v3916_v0 = vpack.c.bf16 %v281_v55, %v281_v55 }
 0x2ac   :  { %398 = vrot.lane.b32.xlu0 %v3900_v57, %s3733_s22  ;;  %447 = vrot.lane.b32.xlu1 %v3898_v56, %s3733_s22 }
 0x2ad   :  { %v300_v58 = vpop.permute.xlu0 %299  ;;  %v275_v59 = vpop.permute.xlu1 %274 }
 0x2ae   :  { %v306_v60 = vsel %vm301_vm7, %v300_v58, 0  ;;  %v3907_v61 = vpack.c.bf16 %v275_v59, %v275_v59 }
 0x2af   :  { %3283 = vmatpush3.bf16.xpose.msra.mxu1 %v306_v60 }
 0x2b0   :  { %545 = vrot.lane.b32.xlu1 %v3907_v61, %s3733_s22  ;;  %496 = vrot.lane.b32.xlu0 %v3909_v62, %s3733_s22 }
 0x2b1   :  { %v287_v63 = vpop.permute.xlu1 %286  ;;  %3294 = vmatprep.subr.bf16.mxu1 %v3727_v6 }
 0x2b2   :  { %v3918_v1 = vpack.c.bf16 %v287_v63, %v287_v63 }
 0x2b4   :  { %643 = vrot.lane.b32.xlu1 %v3918_v1, %s3733_s22  ;;  %594 = vrot.lane.b32.xlu0 %v3916_v0, %s3733_s22 }
 0x2b6   :  { %3285 = vmatmul.mubr.msk.bf16.vlgmr.msra.gmra.mrb[8].mxu1 %vm301_vm7, %v290_v50 }
 0x2b7   :  { %3296 = vmatprep.mubr.msk.bf16.mxu1 %vm3729_vm5, %v3727_v6 }
 0x2b8   :  { %813 = vrot.lane.b32.xlu1 %v290_v50, %s3734_s23 }
 0x31a   :  { %v350_v2 = vpop.permute.xlu1 %349 }
 0x31b   :  { %v355_v3 = vsel %vm301_vm7, %v350_v2, 0 }
 0x31c   :  { %3289 = vmatpush3.bf16.xpose.msra.mxu0 %v355_v3 }
 0x31d   :  { %3300 = vmatprep.subr.bf16.mxu0 %v3727_v6 }
 0x31e   :  { %v399_v4 = vpop.permute.xlu0 %398  ;;  %v448_v7 = vpop.permute.xlu1 %447 }
 0x31f   :  { %v404_v5 = vsel %vm301_vm7, %v399_v4, 0  ;;  %v453_v8 = vsel %vm301_vm7, %v448_v7, 0 }
 0x320   :  { %3295 = vmatpush3.bf16.xpose.msra.mxu1 %v404_v5 }
 0x321   :  { %3306 = vmatprep.subr.bf16.mxu1 %v3727_v6 }
 0x322   :  { %v497_v9 = vpop.permute.xlu0 %496  ;;  %v546_v11 = vpop.permute.xlu1 %545 }
 0x323   :  { %3291 = vmatmul.mubr.msk.bf16.vlgmr.msra.gmra.mrb[0].mxu0 %vm301_vm7, %v3894_v53  ;;  %v502_v10 = vsel %vm301_vm7, %v497_v9, 0  ;;  %v551_v12 = vsel %vm301_vm7, %v546_v11, 0 }
 0x324   :  { %3301 = vmatpush3.bf16.xpose.msra.mxu0 %v453_v8  ;;  %3302 = vmatprep.mubr.msk.bf16.mxu0 %vm3729_vm5, %v3727_v6 }
 0x325   :  { %3312 = vmatprep.subr.bf16.mxu0 %v3727_v6 }
 0x326   :  { %v595_v13 = vpop.permute.xlu0 %594  ;;  %v644_v14 = vpop.permute.xlu1 %643 }
 0x327   :  { %3297 = vmatmul.mubr.msk.bf16.vlgmr.msra.gmra.mrb[12].mxu1 %vm301_vm7, %v3900_v57  ;;  %v600_v15 = vsel %vm301_vm7, %v595_v13, 0  ;;  %v649_v16 = vsel %vm301_vm7, %v644_v14, 0 }
 0x328   :  { %3307 = vmatpush3.bf16.xpose.msra.mxu1 %v502_v10  ;;  %3308 = vmatprep.mubr.msk.bf16.mxu1 %vm3729_vm5, %v3727_v6 }
 0x329   :  { %3318 = vmatprep.subr.bf16.mxu1 %v3727_v6 }
 0x32a   :  { %v814_v17 = vpop.permute.xlu1 %813 }
 0x32b   :  { %3303 = vmatmul.mubr.msk.bf16.vlgmr.msra.gmra.mrb[4].mxu0 %vm301_vm7, %v3898_v56  ;;  %v820_v18 = vsel %vm818_vm8, %v814_v17, 0 }
 0x32c   :  { %3313 = vmatpush3.bf16.xpose.msra.mxu0 %v551_v12  ;;  %3314 = vmatprep.mubr.msk.bf16.mxu0 %vm3729_vm5, %v3727_v6 }
 0x32d   :  { %3324 = vmatprep.subr.bf16.mxu0 %v3727_v6 }
 0x32f   :  { %3309 = vmatmul.mubr.msk.bf16.vlgmr.msra.gmra.mrb[16].mxu1 %vm301_vm7, %v3909_v62 }
 0x330   :  { %3319 = vmatpush3.bf16.xpose.msra.mxu1 %v600_v15  ;;  %3320 = vmatprep.mubr.msk.bf16.mxu1 %vm3729_vm5, %v3727_v6 }
 0x331   :  { %3330 = vmatprep.subr.bf16.mxu1 %v3727_v6 }
 0x333   :  { %3315 = vmatmul.mubr.msk.bf16.vlgmr.msra.gmra.mrb[8].mxu0 %vm301_vm7, %v3907_v61 }
 0x334   :  { %3325 = vmatpush3.bf16.xpose.msra.mxu0 %v649_v16  ;;  %3326 = vmatprep.mubr.msk.bf16.mxu0 %vm3729_vm5, %v3727_v6 }
 0x335   :  { %3336 = vmatprep.subr.bf16.mxu0 %v3727_v6 }
 0x337   :  { %3321 = vmatmul.mubr.msk.bf16.vlgmr.msra.gmra.mrb[20].mxu1 %vm301_vm7, %v3916_v0 }
 0x338   :  { %3331 = vmatpush3.bf16.msra.mxu1 %v820_v18  ;;  %3332 = vmatprep.mubr.msk.bf16.mxu1 %vm3729_vm5, %v3727_v6 }
 0x339   :  { %3342 = vmatprep.subr.bf16.mxu1 %v3727_v6 }
 0x33b   :  { %3327 = vmatmul.mubr.msk.bf16.vlgmr.msra.gmra.mrb[12].mxu0 %vm301_vm7, %v3918_v1 }
 0x33c   :  { %3338 = vmatprep.mubr.msk.bf16.mxu0 %vm3729_vm5, %v3727_v6 }
 0x389   :  { %v342_v19 = vpop.f32.mrb[8].mxu1 }
 0x38a   :  { %v691_v20 = vmul.f32 0.35355338, %v342_v19  ;;  %v3286_v21 = vpop.f32.mrb[9].mxu1 }
 0x38b   :  { %v345_v22 = vpop.f32.mrb[10].mxu1 }
 0x38c   :  { %v3287_v23 = vpop.f32.mrb[11].mxu1  ;;  %v3973_v24 = vadd.f32 %v3850_v27, %v691_v20 }
 0x38e   :  { %v717_v25 = vsel %vm301_vm7, %v3973_v24, -inf }
 0x38f   :  { %718 = vmax.xlane.f32.xlu0 %v717_v25 }
 0x3f6   :  { %v391_v26 = vpop.f32.mrb[0].mxu0 }
 0x3f7   :  { %v692_v28 = vmul.f32 0.35355338, %v391_v26  ;;  %v3292_v30 = vpop.f32.mrb[1].mxu0 }
 0x3f8   :  { %v394_v31 = vpop.f32.mrb[2].mxu0 }
 0x3f9   :  { %v3293_v32 = vpop.f32.mrb[3].mxu0  ;;  %v3978_v33 = vadd.f32 %v3850_v27, %v692_v28 }
 0x3fa   :  { %v440_v34 = vpop.f32.mrb[12].mxu1 }
 0x3fb   :  { %v693_v35 = vmul.f32 0.35355338, %v440_v34  ;;  %v3298_v36 = vpop.f32.mrb[13].mxu1  ;;  %v720_v37 = vsel %vm301_vm7, %v3978_v33, -inf }
 0x3fc   :  { %721 = vmax.xlane.f32.xlu1 %v720_v37  ;;  %v443_v38 = vpop.f32.mrb[14].mxu1 }
 0x3fd   :  { %v3299_v40 = vpop.f32.mrb[15].mxu1  ;;  %v711_v42 = vadd.f32 %v3850_v27, %v693_v35 }
 0x3fe   :  { %v489_v43 = vpop.f32.mrb[4].mxu0 }
 0x3ff   :  { %v694_v44 = vmul.f32 0.35355338, %v489_v43  ;;  %v3304_v45 = vpop.f32.mrb[5].mxu0  ;;  %v723_v46 = vsel %vm301_vm7, %v711_v42, -inf }
 0x400   :  { %v492_v47 = vpop.f32.mrb[6].mxu0  ;;  %724 = vmax.xlane.f32.xlu0 %v723_v46 }
 0x401   :  { %v3305_v48 = vpop.f32.mrb[7].mxu0  ;;  %v712_v49 = vadd.f32 %v3850_v27, %v694_v44 }
 0x402   :  { %v538_v50 = vpop.f32.mrb[16].mxu1 }
 0x403   :  { %v695_v51 = vmul.f32 0.35355338, %v538_v50  ;;  %v3310_v52 = vpop.f32.mrb[17].mxu1  ;;  %v726_v54 = vsel %vm301_vm7, %v712_v49, -inf }
 0x404   :  { %727 = vmax.xlane.f32.xlu0 %v726_v54  ;;  %v541_v55 = vpop.f32.mrb[18].mxu1 }
 0x405   :  { %v3311_v58 = vpop.f32.mrb[19].mxu1  ;;  %v3987_v59 = vadd.f32 %v3855_v29, %v695_v51 }
 0x406   :  { %v587_v60 = vpop.f32.mrb[8].mxu0 }
 0x407   :  { %v696_v63 = vmul.f32 0.35355338, %v587_v60  ;;  %v3316_v2 = vpop.f32.mrb[9].mxu0  ;;  %v729_v3 = vsel %vm301_vm7, %v3987_v59, -inf }
 0x408   :  { %v590_v4 = vpop.f32.mrb[10].mxu0  ;;  %730 = vmax.xlane.f32.xlu1 %v729_v3 }
 0x409   :  { %v3317_v5 = vpop.f32.mrb[11].mxu0  ;;  %v3992_v7 = vadd.f32 %v3855_v29, %v696_v63 }
 0x40a   :  { %v636_v8 = vpop.f32.mrb[20].mxu1 }
 0x40b   :  { %v697_v9 = vmul.f32 0.35355338, %v636_v8  ;;  %v3322_v10 = vpop.f32.mrb[21].mxu1  ;;  %v732_v11 = vsel %vm301_vm7, %v3992_v7, -inf }
 0x40c   :  { %733 = vmax.xlane.f32.xlu0 %v732_v11  ;;  %v639_v12 = vpop.f32.mrb[22].mxu1 }
 0x40d   :  { %v3323_v13 = vpop.f32.mrb[23].mxu1  ;;  %v715_v14 = vadd.f32 %v3855_v29, %v697_v9 }
 0x40e   :  { %v685_v15 = vpop.f32.mrb[12].mxu0 }
 0x40f   :  { %v698_v16 = vmul.f32 0.35355338, %v685_v15  ;;  %v3328_v17 = vpop.f32.mrb[13].mxu0  ;;  %v735_v18 = vsel %vm301_vm7, %v715_v14, -inf }
 0x410   :  { %v688_v19 = vpop.f32.mrb[14].mxu0  ;;  %736 = vmax.xlane.f32.xlu1 %v735_v18 }
 0x411   :  { %v3329_v20 = vpop.f32.mrb[15].mxu0  ;;  %v716_v21 = vadd.f32 %v3855_v29, %v698_v16 }
 0x413   :  { %v738_v22 = vsel %vm301_vm7, %v716_v21, -inf }
 0x414   :  { %739 = vmax.xlane.f32.xlu0 %v738_v22 }
 0x41c   :  { %v719_v23 = vpop.xlane.xlu0 %718 }
 0x41d   :  { %v741_v25 = vsub.f32 %v3973_v24, %v719_v23 }
 0x41f   :  { %v749_v26 = vmul.f32 1.442695, %v741_v25 }
 0x421   :  { %910 = vrot.lane.b32.xlu1 %v3900_v57, %s3734_s23  ;;  %3646 = vpow2.f32 %v749_v26 }
 0x425   :  { %958 = vrot.lane.b32.xlu1 %v3898_v56, %s3734_s23 }
 0x42a   :  { %862 = vrot.lane.b32.xlu0 %v3894_v53, %s3734_s23 }
 0x42b   :  { %v4007_v28 = vpop.eup %3646 }
 0x42c   :  { %v765_v30 = vsel %vm301_vm7, %v4007_v28, 0.0 }
 0x449   :  { %766 = vadd.xlane.f32.xlu1 %v765_v30 }
 0x489   :  { %v722_v31 = vpop.xlane.xlu1 %721 }
 0x48a   :  { %v742_v57 = vsub.f32 %v3978_v33, %v722_v31 }
 0x48c   :  { %v751_v32 = vmul.f32 1.442695, %v742_v57 }
 0x48d   :  { %v725_v34 = vpop.xlane.xlu0 %724 }
 0x48e   :  { %3648 = vpow2.f32 %v751_v32  ;;  %v743_v56 = vsub.f32 %v711_v42, %v725_v34 }
 0x490   :  { %v753_v35 = vmul.f32 1.442695, %v743_v56 }
 0x491   :  { %v728_v53 = vpop.xlane.xlu0 %727 }
 0x492   :  { %3650 = vpow2.f32 %v753_v35  ;;  %v744_v36 = vsub.f32 %v712_v49, %v728_v53 }
 0x494   :  { %v755_v24 = vmul.f32 1.442695, %v744_v36 }
 0x495   :  { %v731_v48 = vpop.xlane.xlu1 %730 }
 0x496   :  { %3652 = vpow2.f32 %v755_v24  ;;  %v745_v49 = vsub.f32 %v3987_v59, %v731_v48 }
 0x498   :  { %v4012_v37 = vpop.eup %3648  ;;  %v757_v52 = vmul.f32 1.442695, %v745_v49 }
 0x499   :  { %v768_v38 = vsel %vm301_vm7, %v4012_v37, 0.0  ;;  %v734_v43 = vpop.xlane.xlu0 %733 }
 0x49a   :  { %769 = vadd.xlane.f32.xlu0 %v768_v38  ;;  %v746_v51 = vsub.f32 %v3992_v7, %v734_v43  ;;  %3654 = vpow2.f32 %v757_v52 }
 0x49c   :  { %v4016_v40 = vpop.eup %3650  ;;  %v759_v55 = vmul.f32 1.442695, %v746_v51 }
 0x49d   :  { %v771_v33 = vsel %vm301_vm7, %v4016_v40, 0.0  ;;  %v737_v50 = vpop.xlane.xlu1 %736 }
 0x49e   :  { %772 = vadd.xlane.f32.xlu1 %v771_v33  ;;  %v747_v54 = vsub.f32 %v715_v14, %v737_v50  ;;  %3656 = vpow2.f32 %v759_v55 }
 0x4a0   :  { %v4020_v42 = vpop.eup %3652  ;;  %v761_v58 = vmul.f32 1.442695, %v747_v54 }
 0x4a1   :  { %v740_v44 = vpop.xlane.xlu0 %739  ;;  %v774_v45 = vsel %vm301_vm7, %v4020_v42, 0.0  ;;  %v911_v2 = vpop.permute.xlu1 %910 }
 0x4a2   :  { %775 = vadd.xlane.f32.xlu0 %v774_v45  ;;  %v748_v60 = vsub.f32 %v716_v21, %v740_v44  ;;  %3658 = vpow2.f32 %v761_v58  ;;  %v916_v14 = vsel %vm818_vm8, %v911_v2, 0 }
 0x4a4   :  { %v763_v63 = vmul.f32 1.442695, %v748_v60 }
 0x4a5   :  { %v863_v46 = vpop.permute.xlu0 %862  ;;  %v959_v3 = vpop.permute.xlu1 %958 }
 0x4a6   :  { %v868_v47 = vsel %vm818_vm8, %v863_v46, 0  ;;  %3660 = vpow2.f32 %v763_v63  ;;  %v964_v22 = vsel %vm818_vm8, %v959_v3, 0 }
 0x4a7   :  { %3337 = vmatpush3.bf16.msra.mxu0 %v868_v47 }
 0x4a8   :  { %3348 = vmatprep.subr.bf16.mxu0 %v3727_v6 }
 0x4af   :  { %1054 = vrot.lane.b32.xlu1 %v3907_v61, %s3734_s23  ;;  %v4032_v61 = vpop.eup %3654 }
 0x4b0   :  { %v777_v59 = vsel %vm301_vm7, %v4032_v61, 0.0 }
 0x4b8   :  { %1006 = vrot.lane.b32.xlu0 %v3909_v62, %s3734_s23  ;;  %v4034_v62 = vpop.eup %3656 }
 0x4b9   :  { %v4038_v4 = vpop.eup %3658  ;;  %v780_v7 = vsel %vm301_vm7, %v4034_v62, 0.0 }
 0x4ba   :  { %v783_v8 = vsel %vm301_vm7, %v4038_v4, 0.0  ;;  %v4044_v9 = vpop.eup %3660 }
 0x4bb   :  { %v786_v10 = vsel %vm301_vm7, %v4044_v9, 0.0 }
 0x4d3   :  { %778 = vadd.xlane.f32.xlu1 %v777_v59 }
 0x4d6   :  { %v767_v5 = vpop.xlane.xlu1 %766 }
 0x4d7   :  { %3662 = vrcp.f32 %v767_v5  ;;  %781 = vadd.xlane.f32.xlu0 %v780_v7  ;;  %784 = vadd.xlane.f32.xlu1 %v783_v8 }
 0x4db   :  { %787 = vadd.xlane.f32.xlu0 %v786_v10 }
 0x4e1   :  { %v3663_v11 = vpop.eup %3662 }
 0x4e2   :  { %v797_v12 = vmul.f32 %v3663_v11, %v4007_v28 }
 0x4e4   :  { %v805_v13 = vpack.c.bf16 %v797_v12, %v797_v12 }
 0x4e6   :  { %3333 = vmatmul.mubr.msk.bf16.vlgmr.msra.gmra.mrb[24].mxu1 %vm301_vm7, %v805_v13 }
 0x4e7   :  { %3343 = vmatpush3.bf16.msra.mxu1 %v916_v14  ;;  %3344 = vmatprep.mubr.msk.bf16.mxu1 %vm3729_vm5, %v3727_v6  ;;  %v3619_v14 = vld [vmem:[%s4537_s5 + $0x8] sm:$0xff]  }
 0x4e8   :  { %1150 = vrot.lane.b32.xlu1 %v3918_v1, %s3734_s23  ;;  %3354 = vmatprep.subr.bf16.mxu1 %v3727_v6 }
 0x4f1   :  { %1102 = vrot.lane.b32.xlu0 %v3916_v0, %s3734_s23 }
 0x527   :  { %v770_v15 = vpop.xlane.xlu0 %769 }
 0x528   :  { %3664 = vrcp.f32 %v770_v15 }
 0x52b   :  { %v773_v16 = vpop.xlane.xlu1 %772 }
 0x52c   :  { %3666 = vrcp.f32 %v773_v16 }
 0x52f   :  { %v776_v17 = vpop.xlane.xlu0 %775  ;;  %v1055_v30 = vpop.permute.xlu1 %1054 }
 0x530   :  { %3668 = vrcp.f32 %v776_v17  ;;  %v1060_v57 = vsel %vm818_vm8, %v1055_v30, 0 }
 0x532   :  { %v3665_v18 = vpop.eup %3664 }
 0x533   :  { %v798_v19 = vmul.f32 %v3665_v18, %v4012_v37  ;;  %v1007_v23 = vpop.permute.xlu0 %1006 }
 0x534   :  { %v1012_v28 = vsel %vm818_vm8, %v1007_v23, 0 }
 0x535   :  { %v806_v20 = vpack.c.bf16 %v798_v19, %v798_v19 }
 0x536   :  { %v3667_v21 = vpop.eup %3666 }
 0x537   :  { %v799_v1 = vmul.f32 %v3667_v21, %v4016_v40  ;;  %3339 = vmatmul.mubr.msk.bf16.vlgmr.msra.gmra.mrb[16].mxu0 %vm301_vm7, %v806_v20 }
 0x538   :  { %3349 = vmatpush3.bf16.msra.mxu0 %v964_v22  ;;  %3350 = vmatprep.mubr.msk.bf16.mxu0 %vm3729_vm5, %v3727_v6 }
 0x539   :  { %v807_v0 = vpack.c.bf16 %v799_v1, %v799_v1  ;;  %3360 = vmatprep.subr.bf16.mxu0 %v3727_v6 }
 0x53a   :  { %v3669_v25 = vpop.eup %3668 }
 0x53b   :  { %v800_v26 = vmul.f32 %v3669_v25, %v4020_v42  ;;  %3345 = vmatmul.mubr.msk.bf16.vlgmr.msra.gmra.mrb[28].mxu1 %vm301_vm7, %v807_v0 }
 0x53c   :  { %3355 = vmatpush3.bf16.msra.mxu1 %v1012_v28  ;;  %3356 = vmatprep.mubr.msk.bf16.mxu1 %vm3729_vm5, %v3727_v6 }
 0x53d   :  { %v808_v31 = vpack.c.bf16 %v800_v26, %v800_v26  ;;  %3366 = vmatprep.subr.bf16.mxu1 %v3727_v6 }
 0x53f   :  { %3351 = vmatmul.mubr.msk.bf16.vlgmr.msra.gmra.mrb[20].mxu0 %vm301_vm7, %v808_v31 }
 0x540   :  { %3361 = vmatpush3.bf16.msra.mxu0 %v1060_v57  ;;  %3362 = vmatprep.mubr.msk.bf16.mxu0 %vm3729_vm5, %v3727_v6 }
 0x541   :  { %3372 = vmatprep.subr.bf16.mxu0 %v3727_v6 }
 0x560   :  { %v779_v32 = vpop.xlane.xlu1 %778 }
 0x561   :  { %3670 = vrcp.f32 %v779_v32 }
 0x564   :  { %v782_v34 = vpop.xlane.xlu0 %781  ;;  %v785_v56 = vpop.xlane.xlu1 %784 }
 0x565   :  { %3672 = vrcp.f32 %v782_v34 }
 0x566   :  { %3674 = vrcp.f32 %v785_v56 }
 0x568   :  { %v788_v35 = vpop.xlane.xlu0 %787  ;;  %v1151_v42 = vpop.permute.xlu1 %1150 }
 0x569   :  { %3676 = vrcp.f32 %v788_v35  ;;  %v1156_v47 = vsel %vm818_vm8, %v1151_v42, 0 }
 0x56b   :  { %v3671_v53 = vpop.eup %3670 }
 0x56c   :  { %v801_v36 = vmul.f32 %v3671_v53, %v4032_v61  ;;  %v1103_v24 = vpop.permute.xlu0 %1102 }
 0x56d   :  { %v1108_v33 = vsel %vm818_vm8, %v1103_v24, 0 }
 0x56e   :  { %v809_v37 = vpack.c.bf16 %v801_v36, %v801_v36 }
 0x56f   :  { %v3673_v38 = vpop.eup %3672 }
 0x570   :  { %v3675_v40 = vpop.eup %3674  ;;  %v802_v43 = vmul.f32 %v3673_v38, %v4034_v62  ;;  %3357 = vmatmul.mubr.msk.bf16.vlgmr.msra.gmra.mrb[32].mxu1 %vm301_vm7, %v809_v37 }
 0x571   :  { %3367 = vmatpush3.bf16.msra.mxu1 %v1108_v33  ;;  %3368 = vmatprep.mubr.msk.bf16.mxu1 %vm3729_vm5, %v3727_v6  ;;  %v803_v44 = vmul.f32 %v3675_v40, %v4038_v4 }
 0x572   :  { %v810_v45 = vpack.c.bf16 %v802_v43, %v802_v43  ;;  %3378 = vmatprep.subr.bf16.mxu1 %v3727_v6 }
 0x573   :  { %v3677_v46 = vpop.eup %3676  ;;  %v811_v49 = vpack.c.bf16 %v803_v44, %v803_v44 }
 0x574   :  { %3363 = vmatmul.mubr.msk.bf16.vlgmr.msra.gmra.mrb[24].mxu0 %vm301_vm7, %v810_v45  ;;  %v804_v48 = vmul.f32 %v3677_v46, %v4044_v9  ;;  %v3618_v9 = vld [vmem:[%s4537_s5] sm:$0xff]  }
 0x575   :  { %3373 = vmatpush3.bf16.msra.mxu0 %v1156_v47  ;;  %3374 = vmatprep.mubr.msk.bf16.mxu0 %vm3729_vm5, %v3727_v6  ;;  %v3043_v45 = vld [vmem:[%s4538_s6] ss:$0 sm:$0xff] }
 0x576   :  { %3386 = vmatprep.subr.bf16.mxu0 %v3727_v6  ;;  %v812_v50 = vpack.c.bf16 %v804_v48, %v804_v48 }
 0x578   :  { %3369 = vmatmul.mubr.msk.bf16.vlgmr.msra.gmra.mrb[36].mxu1 %vm301_vm7, %v811_v49 }
 0x579   :  { %3382 = vmatprep.mubr.msk.bf16.mxu1 %vm3729_vm5, %v3727_v6  ;;  %3379 = vmatpush3.bf16.msra.mxu1 %v3618_v9  ;;  %v3623_v9 = vld [vmem:[%s4540_s11 + $0x8] sm:$0xff]  }
 0x57a   :  { %3380 = vmatprep.subr.bf16.mxu1 %v3727_v6 }
 0x57c   :  { %3375 = vmatmul.mubr.msk.bf16.vlgmr.msra.gmra.mrb[28].mxu0 %vm301_vm7, %v812_v50 }
 0x57d   :  { %3390 = vmatprep.mubr.msk.bf16.mxu0 %vm3729_vm5, %v3727_v6  ;;  %3381 = vmatpush3.bf16.msra.mxu1 %v3619_v14 }
 0x57e   :  { %3394 = vmatprep.subr.bf16.mxu1 %v3727_v6 }
 0x5b9   :  { %v856_v51 = vpop.f32.mrb[24].mxu1 }
 0x5ba   :  { %v3334_v52 = vpop.f32.mrb[25].mxu1 }
 0x5bb   :  { %v859_v54 = vpop.f32.mrb[26].mxu1 }
 0x5bc   :  { %v3335_v55 = vpop.f32.mrb[27].mxu1 }
 0x60a   :  { %v904_v58 = vpop.f32.mrb[16].mxu0 }
 0x60b   :  { %v3340_v60 = vpop.f32.mrb[17].mxu0 }
 0x60c   :  { %v907_v63 = vpop.f32.mrb[18].mxu0 }
 0x60d   :  { %v3341_v2 = vpop.f32.mrb[19].mxu0 }
 0x60e   :  { %v952_v61 = vpop.f32.mrb[28].mxu1 }
 0x60f   :  { %v3346_v62 = vpop.f32.mrb[29].mxu1 }
 0x610   :  { %v955_v3 = vpop.f32.mrb[30].mxu1 }
 0x611   :  { %v3347_v59 = vpop.f32.mrb[31].mxu1 }
 0x612   :  { %v1000_v4 = vpop.f32.mrb[20].mxu0 }
 0x613   :  { %v3352_v5 = vpop.f32.mrb[21].mxu0 }
 0x614   :  { %v1003_v7 = vpop.f32.mrb[22].mxu0 }
 0x615   :  { %v3353_v8 = vpop.f32.mrb[23].mxu0  ;;  %v3621_v7 = vld [vmem:[%s4539_s9 + $0x8] sm:$0xff]  }
 0x616   :  { %v3622_v8 = vld [vmem:[%s4540_s11] sm:$0xff]  }
 0x643   :  { %v1048_v10 = vpop.f32.mrb[32].mxu1 }
 0x644   :  { %v3358_v11 = vpop.f32.mrb[33].mxu1 }
 0x645   :  { %v1051_v12 = vpop.f32.mrb[34].mxu1  ;;  %v3625_v11 = vld [vmem:[%s4540_s11 + $0x18] sm:$0xff]  }
 0x646   :  { %v3359_v13 = vpop.f32.mrb[35].mxu1  ;;  %v3626_v12 = vld [vmem:[%s4540_s11 + $0x20] sm:$0xff]  }
 0x647   :  { %v1096_v15 = vpop.f32.mrb[24].mxu0  ;;  %v3627_v13 = vld [vmem:[%s4540_s11 + $0x28] sm:$0xff]  }
 0x648   :  { %v3586_v16 = vpack.i.bf16 %v1096_v15, %v904_v58  ;;  %v3364_v17 = vpop.f32.mrb[25].mxu0 }
 0x649   :  { %v1099_v18 = vpop.f32.mrb[26].mxu0 }
 0x64a   :  { %3587 = vrot.lane.b32.xlu0 %v3586_v16, %s3735_s28  ;;  %v3365_v19 = vpop.f32.mrb[27].mxu0 }
 0x64b   :  { %v1144_v20 = vpop.f32.mrb[36].mxu1 }
 0x64c   :  { %v3591_v21 = vpack.i.bf16 %v1144_v20, %v952_v61  ;;  %v3370_v22 = vpop.f32.mrb[37].mxu1 }
 0x64d   :  { %v1147_v1 = vpop.f32.mrb[38].mxu1 }
 0x64e   :  { %3592 = vrot.lane.b32.xlu1 %v3591_v21, %s3736_s29  ;;  %v3371_v23 = vpop.f32.mrb[39].mxu1  ;;  %v3047_v21 = vld [vmem:[%s4541_s7] ss:$0 sm:$0xff] }
 0x64f   :  { %v1192_v0 = vpop.f32.mrb[28].mxu0 }
 0x650   :  { %v3596_v25 = vpack.i.bf16 %v1192_v0, %v1000_v4  ;;  %v3376_v26 = vpop.f32.mrb[29].mxu0 }
 0x651   :  { %v1195_v28 = vpop.f32.mrb[30].mxu0 }
 0x652   :  { %3597 = vrot.lane.b32.xlu0 %v3596_v25, %s3737_s0  ;;  %v3377_v30 = vpop.f32.mrb[31].mxu0  ;;  %v3048_v25 = vld [vmem:[%s4542_s8] ss:$0 sm:$0xff] }
 0x6bc   :  { %v3588_v31 = vpop.permute.xlu0 %3587 }
 0x6bd   :  { %v3590_v32 = vunpack.i.h.bf16 %v3588_v31  ;;  %v3589_v34 = vunpack.i.l.bf16 %v3588_v31 }
 0x6bf   :  { %v1222_v36 = vsel %vm301_vm7, %v856_v51, %v3589_v34  ;;  %v1223_v24 = vsel %vm301_vm7, %v1048_v10, %v3590_v32  ;;  %v3624_v10 = vld [vmem:[%s4540_s11 + $0x10] sm:$0xff]   ;;  %v3629_v32 = vld [vmem:[%s4540_s11 + $0x38] sm:$0xff]   ;;  %v3049_v34 = vld [vmem:[%s4543_s10] ss:$0 sm:$0xff] }
 0x6c0   :  { %v3593_v57 = vpop.permute.xlu1 %3592 }
 0x6c1   :  { %v3595_v56 = vunpack.i.h.bf16 %v3593_v57  ;;  %v3594_v35 = vunpack.i.l.bf16 %v3593_v57  ;;  %v3628_v57 = vld [vmem:[%s4540_s11 + $0x30] sm:$0xff]  }
 0x6c3   :  { %v1226_v40 = vsel %vm1224_vm9, %v1223_v24, %v3595_v56  ;;  %v1225_v43 = vsel %vm1224_vm9, %v1222_v36, %v3594_v35 }
 0x6c4   :  { %v3598_v53 = vpop.permute.xlu0 %3597 }
 0x6c5   :  { %v3600_v37 = vunpack.i.h.bf16 %v3598_v53  ;;  %v3599_v38 = vunpack.i.l.bf16 %v3598_v53 }
 0x6c7   :  { %v1228_v33 = vsel %vm1227_vm10, %v1225_v43, %v3599_v38  ;;  %v1229_v42 = vsel %vm1227_vm10, %v1226_v40, %v3600_v37 }
 0x6c8   :  { %v1230_v44 = vpack.c.bf16 %v1229_v42, %v1228_v33  ;;  %v3053_v33 = vld [vmem:[%s4544_s12] ss:$0 sm:$0xff] }
 0x6ca   :  { %3383 = vmatmul.mubr.msk.bf16.vlgmr.msra.gmra.mrb[40].mxu1 %vm225_vm6, %v1230_v44 }
 0x6cb   :  { %3410 = vmatprep.mubr.msk.bf16.mxu1 %vm3729_vm5, %v3727_v6  ;;  %3395 = vmatpush3.bf16.msra.mxu1 %v3622_v8 }
 0x6cc   :  { %3396 = vmatprep.subr.bf16.mxu1 %v3727_v6 }
 0x6cf   :  { %3397 = vmatpush3.bf16.msra.mxu1 %v3623_v9 }
 0x6d0   :  { %3398 = vmatprep.subr.bf16.mxu1 %v3727_v6 }
 0x6d3   :  { %3399 = vmatpush3.bf16.msra.mxu1 %v3624_v10 }
 0x6d4   :  { %3400 = vmatprep.subr.bf16.mxu1 %v3727_v6 }
 0x6d7   :  { %3401 = vmatpush3.bf16.msra.mxu1 %v3625_v11 }
 0x6d8   :  { %3402 = vmatprep.subr.bf16.mxu1 %v3727_v6 }
 0x6db   :  { %3403 = vmatpush3.bf16.msra.mxu1 %v3626_v12  ;;  %v3062_v12 = vld [vmem:[%s4545_s13] ss:$0 sm:$0xff] }
 0x6dc   :  { %3404 = vmatprep.subr.bf16.mxu1 %v3727_v6 }
 0x6df   :  { %3405 = vmatpush3.bf16.msra.mxu1 %v3627_v13 }
 0x6e0   :  { %3406 = vmatprep.subr.bf16.mxu1 %v3727_v6 }
 0x6e3   :  { %3407 = vmatpush3.bf16.msra.mxu1 %v3628_v57 }
 0x6e4   :  { %3408 = vmatprep.subr.bf16.mxu1 %v3727_v6 }
 0x6e7   :  { %3409 = vmatpush3.bf16.msra.mxu1 %v3629_v32 }
 0x6e8   :  { %3440 = vmatprep.subr.bf16.mxu1 %v3727_v6 }
 0x79d   :  { %v1291_v46 = vpop.f32.mrb[40].mxu1 }
 0x79e   :  { %v1292_v47 = vadd.f32 %v3043_v45, %v1291_v46  ;;  %v3384_v48 = vpop.f32.mrb[41].mxu1 }
 0x79f   :  { %v1294_v49 = vpop.f32.mrb[42].mxu1 }
 0x7a0   :  { %v1295_v50 = vadd.f32 %v3043_v45, %v1294_v49  ;;  %v3385_v51 = vpop.f32.mrb[43].mxu1  ;;  %v1298_v52 = vadd.f32 %v1292_v47, %v3877_v41 }
 0x7a2   :  { %v1302_v54 = vsel %vm225_vm6, %v1298_v52, 0.0  ;;  %v1299_v55 = vadd.f32 %v1295_v50, %v3875_v39  ;;  %v3620_v39 = vld [vmem:[%s4539_s9] sm:$0xff]  }
 0x7a3   :  { %1303 = vadd.xlane.f32.xlu1 %v1302_v54  ;;  %3387 = vmatpush3.bf16.msra.mxu0 %v3620_v39 }
 0x7a4   :  { %v1305_v58 = vsel %vm225_vm6, %v1299_v55, 0.0  ;;  %3388 = vmatprep.subr.bf16.mxu0 %v3727_v6 }
 0x7a5   :  { %1306 = vadd.xlane.f32.xlu0 %v1305_v58 }
 0x7a7   :  { %3389 = vmatpush3.bf16.msra.mxu0 %v3621_v7 }
 0x7a8   :  { %3414 = vmatprep.subr.bf16.mxu0 %v3727_v6 }
 0x830   :  { %v1304_v60 = vpop.xlane.xlu1 %1303 }
 0x831   :  { %v1309_v63 = vmul.f32 0.03125, %v1304_v60 }
 0x832   :  { %v1307_v2 = vpop.xlane.xlu0 %1306 }
 0x833   :  { %v1311_v61 = vsub.f32 %v1298_v52, %v1309_v63  ;;  %v1310_v62 = vmul.f32 0.03125, %v1307_v2 }
 0x835   :  { %v1312_v3 = vsub.f32 %v1299_v55, %v1310_v62  ;;  %v1313_v59 = vmul.f32 %v1311_v61, %v1311_v61 }
 0x837   :  { %v1315_v4 = vsel %vm225_vm6, %v1313_v59, 0.0  ;;  %v1314_v5 = vmul.f32 %v1312_v3, %v1312_v3 }
 0x838   :  { %1316 = vadd.xlane.f32.xlu0 %v1315_v4  ;;  %v3630_v4 = vld [vmem:[%s4534_s3 + $0x10] sm:$0xff]  }
 0x839   :  { %v1318_v41 = vsel %vm225_vm6, %v1314_v5, 0.0  ;;  %v3631_v5 = vld [vmem:[%s4534_s3 + $0x18] sm:$0xff]  }
 0x83a   :  { %1319 = vadd.xlane.f32.xlu1 %v1318_v41 }
 0x8c5   :  { %v1317_v14 = vpop.xlane.xlu0 %1316 }
 0x8c6   :  { %v1321_v15 = vmul.f32 0.03125, %v1317_v14 }
 0x8c7   :  { %v1320_v16 = vpop.xlane.xlu1 %1319 }
 0x8c8   :  { %v1323_v17 = vadd.f32 1e-05, %v1321_v15  ;;  %v1322_v18 = vmul.f32 0.03125, %v1320_v16 }
 0x8ca   :  { %3678 = vrsqrt.f32 %v1323_v17  ;;  %v1324_v19 = vadd.f32 1e-05, %v1322_v18  ;;  %v3063_v17 = vld [vmem:[%s4546_s14] ss:$0 sm:$0xff] }
 0x8cc   :  { %3680 = vrsqrt.f32 %v1324_v19 }
 0x8d4   :  { %v3679_v20 = vpop.eup %3678 }
 0x8d5   :  { %v1327_v22 = vmul.f32 %v3679_v20, %v1311_v61 }
 0x8d6   :  { %v3681_v1 = vpop.eup %3680 }
 0x8d7   :  { %v1335_v23 = vmul.f32 %v3047_v21, %v1327_v22  ;;  %v1328_v0 = vmul.f32 %v3681_v1, %v1312_v3  ;;  %v3069_v22 = vld [vmem:[%s4536_s4 + $0x1] ss:$0 sm:$0xff] }
 0x8d9   :  { %v1336_v26 = vmul.f32 %v3047_v21, %v1328_v0  ;;  %v1343_v28 = vadd.f32 %v3048_v25, %v1335_v23 }
 0x8db   :  { %v1344_v30 = vadd.f32 %v3048_v25, %v1336_v26 }
 0x8dd   :  { %v1345_v31 = vpack.c.bf16 %v1344_v30, %v1343_v28 }
 0x8df   :  { %3391 = vmatmul.mubr.msk.bf16.vlgmr.msra.gmra.mrb[32].mxu0 %vm225_vm6, %v1345_v31 }
 0x8e0   :  { %3418 = vmatprep.mubr.msk.bf16.mxu0 %vm3729_vm5, %v3727_v6  ;;  %3415 = vmatpush3.bf16.msra.mxu0 %v3630_v4 }
 0x8e1   :  { %3416 = vmatprep.subr.bf16.mxu0 %v3727_v6 }
 0x8e4   :  { %3417 = vmatpush3.bf16.msra.mxu0 %v3631_v5 }
 0x8e5   :  { %3422 = vmatprep.subr.bf16.mxu0 %v3727_v6 }
 0x9b2   :  { %v1406_v56 = vpop.f32.mrb[32].mxu0 }
 0x9b3   :  { %v1407_v35 = vadd.f32 %v3049_v34, %v1406_v56  ;;  %v3392_v53 = vpop.f32.mrb[33].mxu0 }
 0x9b4   :  { %v1409_v36 = vpop.f32.mrb[34].mxu0 }
 0x9b5   :  { %v1410_v24 = vadd.f32 %v3049_v34, %v1409_v36  ;;  %v3393_v37 = vpop.f32.mrb[35].mxu0  ;;  %v1413_v38 = vmax.f32 %v1407_v35, 0.0 }
 0x9b7   :  { %v1414_v40 = vmax.f32 %v1410_v24, 0.0 }
 0x9b9   :  { %v1415_v43 = vpack.c.bf16 %v1414_v40, %v1413_v38 }
 0x9bb   :  { %3411 = vmatmul.mubr.bf16.vlgmr.msra.gmra.mrb[44].mxu1 %v1415_v43 }
 0x9bc   :  { %3442 = vmatprep.mubr.msk.bf16.mxu1 %vm3729_vm5, %v3727_v6 }
 0xa8e   :  { %v1521_v42 = vpop.f32.mrb[44].mxu1 }
 0xa8f   :  { %v1522_v44 = vadd.f32 %v3053_v33, %v1521_v42  ;;  %v3412_v45 = vpop.f32.mrb[45].mxu1 }
 0xa90   :  { %v1524_v46 = vpop.f32.mrb[46].mxu1 }
 0xa91   :  { %v1525_v47 = vadd.f32 %v3053_v33, %v1524_v46  ;;  %v3413_v48 = vpop.f32.mrb[47].mxu1  ;;  %v1528_v49 = vadd.f32 %v1522_v44, %v1343_v28 }
 0xa93   :  { %v1532_v50 = vsel %vm225_vm6, %v1528_v49, 0.0  ;;  %v1529_v51 = vadd.f32 %v1525_v47, %v1344_v30 }
 0xa94   :  { %1533 = vadd.xlane.f32.xlu0 %v1532_v50 }
 0xa95   :  { %v1535_v52 = vsel %vm225_vm6, %v1529_v51, 0.0 }
 0xa96   :  { %1536 = vadd.xlane.f32.xlu1 %v1535_v52 }
 0xb21   :  { %v1534_v54 = vpop.xlane.xlu0 %1533 }
 0xb22   :  { %v1538_v55 = vmul.f32 0.03125, %v1534_v54 }
 0xb23   :  { %v1537_v58 = vpop.xlane.xlu1 %1536 }
 0xb24   :  { %v1540_v60 = vsub.f32 %v1528_v49, %v1538_v55  ;;  %v1539_v63 = vmul.f32 0.03125, %v1537_v58 }
 0xb26   :  { %v1541_v2 = vsub.f32 %v1529_v51, %v1539_v63  ;;  %v1542_v61 = vmul.f32 %v1540_v60, %v1540_v60 }
 0xb28   :  { %v1544_v62 = vsel %vm225_vm6, %v1542_v61, 0.0  ;;  %v1543_v3 = vmul.f32 %v1541_v2, %v1541_v2 }
 0xb29   :  { %1545 = vadd.xlane.f32.xlu0 %v1544_v62 }
 0xb2a   :  { %v1547_v59 = vsel %vm225_vm6, %v1543_v3, 0.0 }
 0xb2b   :  { %1548 = vadd.xlane.f32.xlu1 %v1547_v59 }
 0xbb6   :  { %v1546_v41 = vpop.xlane.xlu0 %1545 }
 0xbb7   :  { %v1550_v39 = vmul.f32 0.03125, %v1546_v41 }
 0xbb8   :  { %v1549_v7 = vpop.xlane.xlu1 %1548 }
 0xbb9   :  { %v1552_v8 = vadd.f32 1e-05, %v1550_v39  ;;  %v1551_v9 = vmul.f32 0.03125, %v1549_v7 }
 0xbbb   :  { %3682 = vrsqrt.f32 %v1552_v8  ;;  %v1553_v10 = vadd.f32 1e-05, %v1551_v9 }
 0xbbd   :  { %3684 = vrsqrt.f32 %v1553_v10 }
 0xbc5   :  { %v3683_v11 = vpop.eup %3682 }
 0xbc6   :  { %v1556_v13 = vmul.f32 %v3683_v11, %v1540_v60 }
 0xbc7   :  { %v3685_v14 = vpop.eup %3684 }
 0xbc8   :  { %v1564_v15 = vmul.f32 %v3062_v12, %v1556_v13  ;;  %v1557_v16 = vmul.f32 %v3685_v14, %v1541_v2 }
 0xbca   :  { %v1565_v18 = vmul.f32 %v3062_v12, %v1557_v16  ;;  %v4200_v19 = vadd.f32 %v3063_v17, %v1564_v15 }
 0xbcc   :  { %v4202_v20 = vadd.f32 %v3063_v17, %v1565_v18 }
 0xbce   :  { %v1574_v21 = vpack.c.bf16 %v4202_v20, %v4200_v19 }
 0xbd0   :  { %3419 = vmatmul.mubr.msk.bf16.vlgmr.msra.gmra.mrb[36].mxu0 %vm225_vm6, %v1574_v21 }
 0xbd1   :  { %3424 = vmatprep.mubr.msk.bf16.mxu0 %vm3729_vm5, %v3727_v6 }
 0xca3   :  { %v1637_v1 = vpop.f32.mrb[36].mxu0 }
 0xca4   :  { %v1638_v23 = vadd.f32 %v3069_v22, %v1637_v1  ;;  %v3420_v0 = vpop.f32.mrb[37].mxu0 }
 0xca5   :  { %v1640_v25 = vpop.f32.mrb[38].mxu0 }
 0xca6   :  { %1652 = vrot.lane.b32.xlu1 %v1638_v23, %s3732_s21  ;;  %1646 = vrot.lane.b32.xlu0 %v1638_v23, %s3731_s20  ;;  %v3421_v26 = vpop.f32.mrb[39].mxu0  ;;  %v1641_v28 = vadd.f32 %v3069_v22, %v1640_v25  ;;  %v4218_v30 = vpack.c.bf16 %v1638_v23, %v1638_v23 }
 0xca8   :  { %v4232_v36 = vpack.c.bf16 %v1641_v28, %v1641_v28 }
 0xcaa   :  { %1658 = vrot.lane.b32.xlu1 %v1638_v23, %s3730_s2  ;;  %1648 = vrot.lane.b32.xlu0 %v1641_v28, %s3731_s20 }
 0xcae   :  { %1654 = vrot.lane.b32.xlu1 %v1641_v28, %s3732_s21  ;;  %1660 = vrot.lane.b32.xlu0 %v1641_v28, %s3730_s2 }
 0xcb2   :  { %1673 = vrot.lane.b32.xlu1 %v4218_v30, %s3733_s22 }
 0xd18   :  { %v1653_v31 = vpop.permute.xlu1 %1652  ;;  %v1647_v57 = vpop.permute.xlu0 %1646 }
 0xd19   :  { %v4222_v32 = vpack.c.bf16 %v1653_v31, %v1653_v31  ;;  %v4224_v34 = vpack.c.bf16 %v1647_v57, %v1647_v57 }
 0xd1b   :  { %1771 = vrot.lane.b32.xlu1 %v4222_v32, %s3733_s22  ;;  %1722 = vrot.lane.b32.xlu0 %v4224_v34, %s3733_s22 }
 0xd1c   :  { %v1659_v56 = vpop.permute.xlu1 %1658  ;;  %v1649_v35 = vpop.permute.xlu0 %1648 }
 0xd1d   :  { %v4230_v53 = vpack.c.bf16 %v1659_v56, %v1659_v56  ;;  %v4238_v37 = vpack.c.bf16 %v1649_v35, %v1649_v35 }
 0xd1f   :  { %1820 = vrot.lane.b32.xlu0 %v4230_v53, %s3733_s22  ;;  %1869 = vrot.lane.b32.xlu1 %v4232_v36, %s3733_s22 }
 0xd20   :  { %v1655_v24 = vpop.permute.xlu1 %1654  ;;  %v1661_v40 = vpop.permute.xlu0 %1660 }
 0xd21   :  { %v4240_v38 = vpack.c.bf16 %v1655_v24, %v1655_v24  ;;  %v4246_v33 = vpack.c.bf16 %v1661_v40, %v1661_v40 }
 0xd23   :  { %1918 = vrot.lane.b32.xlu0 %v4238_v37, %s3733_s22  ;;  %1967 = vrot.lane.b32.xlu1 %v4240_v38, %s3733_s22 }
 0xd24   :  { %v1674_v43 = vpop.permute.xlu1 %1673 }
 0xd25   :  { %v1679_v42 = vsel %vm301_vm7, %v1674_v43, 0 }
 0xd26   :  { %3423 = vmatpush3.bf16.xpose.msra.mxu0 %v1679_v42 }
 0xd27   :  { %2016 = vrot.lane.b32.xlu0 %v4246_v33, %s3733_s22  ;;  %3428 = vmatprep.subr.bf16.mxu0 %v3727_v6 }
 0xd2d   :  { %3425 = vmatmul.mubr.msk.bf16.vlgmr.msra.gmra.mrb[40].mxu0 %vm301_vm7, %v4218_v30 }
 0xd2e   :  { %3430 = vmatprep.mubr.msk.bf16.mxu0 %vm3729_vm5, %v3727_v6 }
 0xd8d   :  { %v1723_v44 = vpop.permute.xlu0 %1722  ;;  %v1772_v48 = vpop.permute.xlu1 %1771 }
 0xd8e   :  { %v1728_v45 = vsel %vm301_vm7, %v1723_v44, 0  ;;  %v1777_v49 = vsel %vm301_vm7, %v1772_v48, 0 }
 0xd8f   :  { %3429 = vmatpush3.bf16.xpose.msra.mxu0 %v1728_v45 }
 0xd90   :  { %3434 = vmatprep.subr.bf16.mxu0 %v3727_v6 }
 0xd91   :  { %v1821_v46 = vpop.permute.xlu0 %1820  ;;  %v1870_v52 = vpop.permute.xlu1 %1869 }
 0xd92   :  { %v1826_v47 = vsel %vm301_vm7, %v1821_v46, 0  ;;  %v1875_v54 = vsel %vm301_vm7, %v1870_v52, 0 }
 0xd93   :  { %3441 = vmatpush3.bf16.xpose.msra.mxu1 %v1826_v47 }
 0xd94   :  { %3452 = vmatprep.subr.bf16.mxu1 %v3727_v6 }
 0xd95   :  { %v1919_v50 = vpop.permute.xlu0 %1918  ;;  %v1968_v60 = vpop.permute.xlu1 %1967 }
 0xd96   :  { %3431 = vmatmul.mubr.msk.bf16.vlgmr.msra.gmra.mrb[44].mxu0 %vm301_vm7, %v4224_v34  ;;  %v1924_v51 = vsel %vm301_vm7, %v1919_v50, 0  ;;  %v1973_v63 = vsel %vm301_vm7, %v1968_v60, 0 }
 0xd97   :  { %3435 = vmatpush3.bf16.xpose.msra.mxu0 %v1777_v49  ;;  %3436 = vmatprep.mubr.msk.bf16.mxu0 %vm3729_vm5, %v3727_v6 }
 0xd98   :  { %3446 = vmatprep.subr.bf16.mxu0 %v3727_v6 }
 0xd99   :  { %v2017_v55 = vpop.permute.xlu0 %2016 }
 0xd9a   :  { %3443 = vmatmul.mubr.msk.bf16.vlgmr.msra.gmra.mrb[48].mxu1 %vm301_vm7, %v4230_v53  ;;  %v2022_v58 = vsel %vm301_vm7, %v2017_v55, 0 }
 0xd9b   :  { %3453 = vmatpush3.bf16.xpose.msra.mxu1 %v1924_v51  ;;  %3454 = vmatprep.mubr.msk.bf16.mxu1 %vm3729_vm5, %v3727_v6 }
 0xd9c   :  { %3464 = vmatprep.subr.bf16.mxu1 %v3727_v6 }
 0xd9e   :  { %3437 = vmatmul.mubr.msk.bf16.vlgmr.msra.gmra.mrb[48].mxu0 %vm301_vm7, %v4222_v32 }
 0xd9f   :  { %3447 = vmatpush3.bf16.xpose.msra.mxu0 %v1875_v54  ;;  %3448 = vmatprep.mubr.msk.bf16.mxu0 %vm3729_vm5, %v3727_v6 }
 0xda0   :  { %3458 = vmatprep.subr.bf16.mxu0 %v3727_v6 }
 0xda2   :  { %3455 = vmatmul.mubr.msk.bf16.vlgmr.msra.gmra.mrb[52].mxu1 %vm301_vm7, %v4238_v37 }
 0xda3   :  { %3465 = vmatpush3.bf16.xpose.msra.mxu1 %v2022_v58  ;;  %3466 = vmatprep.mubr.msk.bf16.mxu1 %vm3729_vm5, %v3727_v6 }
 0xda4   :  { %3476 = vmatprep.subr.bf16.mxu1 %v3727_v6 }
 0xda6   :  { %3449 = vmatmul.mubr.msk.bf16.vlgmr.msra.gmra.mrb[52].mxu0 %vm301_vm7, %v4232_v36 }
 0xda7   :  { %3459 = vmatpush3.bf16.xpose.msra.mxu0 %v1973_v63  ;;  %3460 = vmatprep.mubr.msk.bf16.mxu0 %vm3729_vm5, %v3727_v6 }
 0xda8   :  { %3470 = vmatprep.subr.bf16.mxu0 %v3727_v6 }
 0xdaa   :  { %3467 = vmatmul.mubr.msk.bf16.vlgmr.msra.gmra.mrb[56].mxu1 %vm301_vm7, %v4246_v33 }
 0xdab   :  { %3478 = vmatprep.mubr.msk.bf16.mxu1 %vm3729_vm5, %v3727_v6 }
 0xdae   :  { %3461 = vmatmul.mubr.msk.bf16.vlgmr.msra.gmra.mrb[56].mxu0 %vm301_vm7, %v4240_v38 }
 0xdaf   :  { %3472 = vmatprep.mubr.msk.bf16.mxu0 %vm3729_vm5, %v3727_v6 }
 0xe00   :  { %v1715_v2 = vpop.f32.mrb[40].mxu0 }
 0xe01   :  { %v2064_v61 = vmul.f32 0.35355338, %v1715_v2  ;;  %v3426_v62 = vpop.f32.mrb[41].mxu0 }
 0xe02   :  { %v1718_v3 = vpop.f32.mrb[42].mxu0 }
 0xe03   :  { %v3427_v59 = vpop.f32.mrb[43].mxu0  ;;  %v4299_v4 = vadd.f32 %v2064_v61, %v3850_v27 }
 0xe05   :  { %v2080_v5 = vsel %vm301_vm7, %v4299_v4, -inf }
 0xe06   :  { %2081 = vmax.xlane.f32.xlu1 %v2080_v5 }
 0xe69   :  { %v1764_v41 = vpop.f32.mrb[44].mxu0 }
 0xe6a   :  { %v2065_v39 = vmul.f32 0.35355338, %v1764_v41  ;;  %v3432_v7 = vpop.f32.mrb[45].mxu0 }
 0xe6b   :  { %v1767_v8 = vpop.f32.mrb[46].mxu0 }
 0xe6c   :  { %v3433_v9 = vpop.f32.mrb[47].mxu0  ;;  %v4304_v10 = vadd.f32 %v2065_v39, %v3850_v27 }
 0xe6d   :  { %v1862_v11 = vpop.f32.mrb[48].mxu1 }
 0xe6e   :  { %v2067_v12 = vmul.f32 0.35355338, %v1862_v11  ;;  %v3444_v13 = vpop.f32.mrb[49].mxu1  ;;  %v2083_v14 = vsel %vm301_vm7, %v4304_v10, -inf }
 0xe6f   :  { %2084 = vmax.xlane.f32.xlu0 %v2083_v14  ;;  %v1865_v15 = vpop.f32.mrb[50].mxu1 }
 0xe70   :  { %v3445_v16 = vpop.f32.mrb[51].mxu1  ;;  %v2075_v17 = vadd.f32 %v2067_v12, %v3850_v27 }
 0xe71   :  { %v1813_v18 = vpop.f32.mrb[48].mxu0 }
 0xe72   :  { %v2066_v21 = vmul.f32 0.35355338, %v1813_v18  ;;  %v3438_v22 = vpop.f32.mrb[49].mxu0  ;;  %v2089_v1 = vsel %vm301_vm7, %v2075_v17, -inf }
 0xe73   :  { %v1816_v23 = vpop.f32.mrb[50].mxu0  ;;  %2090 = vmax.xlane.f32.xlu1 %v2089_v1 }
 0xe74   :  { %v3439_v0 = vpop.f32.mrb[51].mxu0  ;;  %v2074_v25 = vadd.f32 %v2066_v21, %v3850_v27 }
 0xe75   :  { %v1960_v26 = vpop.f32.mrb[52].mxu1 }
 0xe76   :  { %v2069_v28 = vmul.f32 0.35355338, %v1960_v26  ;;  %v3456_v31 = vpop.f32.mrb[53].mxu1  ;;  %v2086_v57 = vsel %vm301_vm7, %v2074_v25, -inf }
 0xe77   :  { %2087 = vmax.xlane.f32.xlu0 %v2086_v57  ;;  %v1963_v56 = vpop.f32.mrb[54].mxu1 }
 0xe78   :  { %v3457_v35 = vpop.f32.mrb[55].mxu1  ;;  %v2077_v24 = vadd.f32 %v2069_v28, %v3855_v29 }
 0xe79   :  { %v1911_v40 = vpop.f32.mrb[52].mxu0 }
 0xe7a   :  { %v2068_v43 = vmul.f32 0.35355338, %v1911_v40  ;;  %v3450_v42 = vpop.f32.mrb[53].mxu0  ;;  %v2095_v44 = vsel %vm301_vm7, %v2077_v24, -inf }
 0xe7b   :  { %v1914_v45 = vpop.f32.mrb[54].mxu0  ;;  %2096 = vmax.xlane.f32.xlu1 %v2095_v44 }
 0xe7c   :  { %v3451_v46 = vpop.f32.mrb[55].mxu0  ;;  %v4315_v27 = vadd.f32 %v2068_v43, %v3855_v29 }
 0xe7d   :  { %v2058_v47 = vpop.f32.mrb[56].mxu1 }
 0xe7e   :  { %v2071_v48 = vmul.f32 0.35355338, %v2058_v47  ;;  %v3468_v49 = vpop.f32.mrb[57].mxu1  ;;  %v2092_v50 = vsel %vm301_vm7, %v4315_v27, -inf }
 0xe7f   :  { %2093 = vmax.xlane.f32.xlu0 %v2092_v50  ;;  %v2061_v51 = vpop.f32.mrb[58].mxu1 }
 0xe80   :  { %v3469_v52 = vpop.f32.mrb[59].mxu1  ;;  %v2079_v54 = vadd.f32 %v2071_v48, %v3855_v29 }
 0xe81   :  { %v2009_v55 = vpop.f32.mrb[56].mxu0 }
 0xe82   :  { %v3462_v58 = vpop.f32.mrb[57].mxu0  ;;  %v2101_v60 = vsel %vm301_vm7, %v2079_v54, -inf  ;;  %v2070_v61 = vmul.f32 0.35355338, %v2009_v55 }
 0xe83   :  { %v2012_v63 = vpop.f32.mrb[58].mxu0  ;;  %2102 = vmax.xlane.f32.xlu1 %v2101_v60 }
 0xe84   :  { %v3463_v2 = vpop.f32.mrb[59].mxu0  ;;  %v2078_v62 = vadd.f32 %v2070_v61, %v3855_v29 }
 0xe86   :  { %v2098_v3 = vsel %vm301_vm7, %v2078_v62, -inf }
 0xe93   :  { %v2082_v59 = vpop.xlane.xlu1 %2081 }
 0xe94   :  { %2224 = vrot.lane.b32.xlu1 %v4224_v34, %s3734_s23  ;;  %v2104_v34 = vsub.f32 %v4299_v4, %v2082_v59 }
 0xe95   :  { %2176 = vrot.lane.b32.xlu0 %v4218_v30, %s3734_s23 }
 0xe96   :  { %v2112_v5 = vmul.f32 1.442695, %v2104_v34 }
 0xe98   :  { %2272 = vrot.lane.b32.xlu1 %v4222_v32, %s3734_s23  ;;  %3686 = vpow2.f32 %v2112_v5 }
 0xe9c   :  { %2368 = vrot.lane.b32.xlu1 %v4232_v36, %s3734_s23 }
 0xea2   :  { %v4334_v30 = vpop.eup %3686 }
 0xea3   :  { %v2128_v32 = vsel %vm301_vm7, %v4334_v30, 0.0 }
 0xeb4   :  { %2099 = vmax.xlane.f32.xlu0 %v2098_v3 }
 0xeca   :  { %2320 = vrot.lane.b32.xlu0 %v4230_v53, %s3734_s23 }
 0xee9   :  { %2129 = vadd.xlane.f32.xlu0 %v2128_v32 }
 0xefc   :  { %v2085_v36 = vpop.xlane.xlu0 %2084 }
 0xefd   :  { %v2105_v29 = vsub.f32 %v4304_v10, %v2085_v36 }
 0xeff   :  { %v2114_v41 = vmul.f32 1.442695, %v2105_v29 }
 0xf00   :  { %v2091_v39 = vpop.xlane.xlu1 %2090 }
 0xf01   :  { %3688 = vpow2.f32 %v2114_v41  ;;  %v2107_v7 = vsub.f32 %v2075_v17, %v2091_v39 }
 0xf03   :  { %v2118_v8 = vmul.f32 1.442695, %v2107_v7 }
 0xf04   :  { %v2088_v53 = vpop.xlane.xlu0 %2087 }
 0xf05   :  { %3690 = vpow2.f32 %v2118_v8  ;;  %v2106_v9 = vsub.f32 %v2074_v25, %v2088_v53 }
 0xf07   :  { %v2116_v4 = vmul.f32 1.442695, %v2106_v9 }
 0xf08   :  { %v2097_v11 = vpop.xlane.xlu1 %2096 }
 0xf09   :  { %3692 = vpow2.f32 %v2116_v4  ;;  %v2109_v12 = vsub.f32 %v2077_v24, %v2097_v11 }
 0xf0b   :  { %v4339_v13 = vpop.eup %3688  ;;  %v2122_v14 = vmul.f32 1.442695, %v2109_v12 }
 0xf0c   :  { %v2094_v15 = vpop.xlane.xlu0 %2093  ;;  %v2131_v16 = vsel %vm301_vm7, %v4339_v13, 0.0 }
 0xf0d   :  { %3694 = vpow2.f32 %v2122_v14  ;;  %2132 = vadd.xlane.f32.xlu1 %v2131_v16  ;;  %v2108_v24 = vsub.f32 %v4315_v27, %v2094_v15 }
 0xf0f   :  { %v4343_v10 = vpop.eup %3690  ;;  %v2120_v40 = vmul.f32 1.442695, %v2108_v24 }
 0xf10   :  { %v2177_v17 = vpop.permute.xlu0 %2176  ;;  %v2103_v18 = vpop.xlane.xlu1 %2102  ;;  %v2137_v21 = vsel %vm301_vm7, %v4343_v10, 0.0 }
 0xf11   :  { %v2182_v22 = vsel %vm818_vm8, %v2177_v17, 0  ;;  %v2111_v1 = vsub.f32 %v2079_v54, %v2103_v18  ;;  %2138 = vadd.xlane.f32.xlu1 %v2137_v21 }
 0xf12   :  { %3471 = vmatpush3.bf16.msra.mxu0 %v2182_v22 }
 0xf13   :  { %v4348_v23 = vpop.eup %3692  ;;  %v2126_v0 = vmul.f32 1.442695, %v2111_v1  ;;  %3482 = vmatprep.subr.bf16.mxu0 %v3727_v6 }
 0xf14   :  { %v2225_v25 = vpop.permute.xlu1 %2224  ;;  %v2134_v26 = vsel %vm301_vm7, %v4348_v23, 0.0 }
 0xf15   :  { %3696 = vpow2.f32 %v2126_v0  ;;  %v2230_v28 = vsel %vm818_vm8, %v2225_v25, 0  ;;  %2135 = vadd.xlane.f32.xlu0 %v2134_v26 }
 0xf16   :  { %3477 = vmatpush3.bf16.msra.mxu1 %v2230_v28  ;;  %3698 = vpow2.f32 %v2120_v40 }
 0xf17   :  { %v4354_v31 = vpop.eup %3694  ;;  %3488 = vmatprep.subr.bf16.mxu1 %v3727_v6 }
 0xf18   :  { %v2143_v57 = vsel %vm301_vm7, %v4354_v31, 0.0  ;;  %v2273_v50 = vpop.permute.xlu1 %2272 }
 0xf19   :  { %2144 = vadd.xlane.f32.xlu1 %v2143_v57  ;;  %v2278_v52 = vsel %vm818_vm8, %v2273_v50, 0  ;;  %v3632_v50 = vld [vmem:[%s4537_s5 + $0x10] sm:$0xff]  }
 0xf1c   :  { %v2369_v54 = vpop.permute.xlu1 %2368 }
 0xf1d   :  { %v2374_v41 = vsel %vm818_vm8, %v2369_v54, 0 }
 0xf1f   :  { %v4359_v56 = vpop.eup %3696 }
 0xf20   :  { %v2149_v35 = vsel %vm301_vm7, %v4359_v56, 0.0  ;;  %v4368_v45 = vpop.eup %3698 }
 0xf21   :  { %2150 = vadd.xlane.f32.xlu1 %v2149_v35  ;;  %v2140_v46 = vsel %vm301_vm7, %v4368_v45, 0.0 }
 0xf2b   :  { %2416 = vrot.lane.b32.xlu0 %v4238_v37, %s3734_s23 }
 0xf32   :  { %2464 = vrot.lane.b32.xlu1 %v4240_v38, %s3734_s23 }
 0xf41   :  { %v2100_v43 = vpop.xlane.xlu0 %2099 }
 0xf42   :  { %v2110_v42 = vsub.f32 %v2078_v62, %v2100_v43 }
 0xf44   :  { %v2124_v44 = vmul.f32 1.442695, %v2110_v42 }
 0xf45   :  { %v2321_v38 = vpop.permute.xlu0 %2320 }
 0xf46   :  { %3700 = vpow2.f32 %v2124_v44  ;;  %v2326_v3 = vsel %vm818_vm8, %v2321_v38, 0 }
 0xf4a   :  { %2141 = vadd.xlane.f32.xlu0 %v2140_v46 }
 0xf50   :  { %v4372_v47 = vpop.eup %3700 }
 0xf51   :  { %v2146_v37 = vsel %vm301_vm7, %v4372_v47, 0.0 }
 0xf52   :  { %2147 = vadd.xlane.f32.xlu0 %v2146_v37 }
 0xf68   :  { %2512 = vrot.lane.b32.xlu0 %v4246_v33, %s3734_s23 }
 0xf76   :  { %v2130_v27 = vpop.xlane.xlu0 %2129 }
 0xf77   :  { %3702 = vrcp.f32 %v2130_v27 }
 0xf81   :  { %v3703_v48 = vpop.eup %3702 }
 0xf82   :  { %v2160_v49 = vmul.f32 %v3703_v48, %v4334_v30 }
 0xf84   :  { %v2168_v51 = vpack.c.bf16 %v2160_v49, %v2160_v49 }
 0xf86   :  { %3473 = vmatmul.mubr.msk.bf16.vlgmr.msra.gmra.mrb[60].mxu0 %vm301_vm7, %v2168_v51 }
 0xf87   :  { %3483 = vmatpush3.bf16.msra.mxu0 %v2278_v52  ;;  %3484 = vmatprep.mubr.msk.bf16.mxu0 %vm3729_vm5, %v3727_v6  ;;  %v3633_v52 = vld [vmem:[%s4537_s5 + $0x18] sm:$0xff]  }
 0xf88   :  { %3494 = vmatprep.subr.bf16.mxu0 %v3727_v6 }
 0xf9a   :  { %v2133_v33 = vpop.xlane.xlu1 %2132 }
 0xf9b   :  { %3704 = vrcp.f32 %v2133_v33 }
 0xf9e   :  { %v2139_v55 = vpop.xlane.xlu1 %2138 }
 0xf9f   :  { %3706 = vrcp.f32 %v2139_v55 }
 0xfa2   :  { %v2136_v58 = vpop.xlane.xlu0 %2135 }
 0xfa3   :  { %3708 = vrcp.f32 %v2136_v58 }
 0xfa5   :  { %v3705_v60 = vpop.eup %3704 }
 0xfa6   :  { %v2161_v63 = vmul.f32 %v3705_v60, %v4339_v13  ;;  %v2145_v2 = vpop.xlane.xlu1 %2144  ;;  %v2417_v30 = vpop.permute.xlu0 %2416 }
 0xfa7   :  { %3710 = vrcp.f32 %v2145_v2  ;;  %v2422_v39 = vsel %vm818_vm8, %v2417_v30, 0 }
 0xfa8   :  { %v2169_v61 = vpack.c.bf16 %v2161_v63, %v2161_v63 }
 0xfa9   :  { %v3707_v62 = vpop.eup %3706 }
 0xfaa   :  { %3479 = vmatmul.mubr.msk.bf16.vlgmr.msra.gmra.mrb[60].mxu1 %vm301_vm7, %v2169_v61  ;;  %v2163_v59 = vmul.f32 %v3707_v62, %v4343_v10 }
 0xfab   :  { %3489 = vmatpush3.bf16.msra.mxu1 %v2326_v3  ;;  %3490 = vmatprep.mubr.msk.bf16.mxu1 %vm3729_vm5, %v3727_v6 }
 0xfac   :  { %3500 = vmatprep.subr.bf16.mxu1 %v3727_v6  ;;  %v2171_v36 = vpack.c.bf16 %v2163_v59, %v2163_v59 }
 0xfad   :  { %v3709_v34 = vpop.eup %3708 }
 0xfae   :  { %v2162_v5 = vmul.f32 %v3709_v34, %v4348_v23  ;;  %v2151_v53 = vpop.xlane.xlu1 %2150 }
 0xfaf   :  { %3712 = vrcp.f32 %v2151_v53 }
 0xfb0   :  { %v2170_v32 = vpack.c.bf16 %v2162_v5, %v2162_v5 }
 0xfb1   :  { %v3711_v29 = vpop.eup %3710 }
 0xfb2   :  { %3485 = vmatmul.mubr.msk.bf16.vlgmr.msra.gmra.mrb[64].mxu0 %vm301_vm7, %v2170_v32  ;;  %3491 = vmatmul.mubr.msk.bf16.vlgmr.msra.gmra.mrb[64].mxu1 %vm301_vm7, %v2171_v36  ;;  %v2165_v7 = vmul.f32 %v3711_v29, %v4354_v31  ;;  %v2465_v16 = vpop.permute.xlu1 %2464 }
 0xfb3   :  { %3495 = vmatpush3.bf16.msra.mxu0 %v2374_v41  ;;  %3501 = vmatpush3.bf16.msra.mxu1 %v2422_v39  ;;  %v2470_v21 = vsel %vm818_vm8, %v2465_v16, 0  ;;  %v3094_v16 = vld [vmem:[%s4538_s6 + $0x1] ss:$0 sm:$0xff] }
 0xfb4   :  { %3502 = vmatprep.mubr.msk.bf16.mxu1 %vm3729_vm5, %v3727_v6  ;;  %3512 = vmatprep.subr.bf16.mxu1 %v3727_v6  ;;  %v2173_v8 = vpack.c.bf16 %v2165_v7, %v2165_v7 }
 0xfb5   :  { %3496 = vmatprep.mubr.msk.bf16.mxu0 %vm3729_vm5, %v3727_v6  ;;  %3506 = vmatprep.subr.bf16.mxu0 %v3727_v6 }
 0xfb9   :  { %v3713_v4 = vpop.eup %3712 }
 0xfba   :  { %3503 = vmatmul.mubr.msk.bf16.vlgmr.msra.gmra.mrb[68].mxu1 %vm301_vm7, %v2173_v8  ;;  %v2167_v13 = vmul.f32 %v3713_v4, %v4359_v56 }
 0xfbb   :  { %3514 = vmatprep.mubr.msk.bf16.mxu1 %vm3729_vm5, %v3727_v6 }
 0xfbc   :  { %v2175_v18 = vpack.c.bf16 %v2167_v13, %v2167_v13 }
 0xfd7   :  { %v2142_v9 = vpop.xlane.xlu0 %2141 }
 0xfd8   :  { %3714 = vrcp.f32 %v2142_v9 }
 0xfdf   :  { %v2148_v11 = vpop.xlane.xlu0 %2147 }
 0xfe0   :  { %3716 = vrcp.f32 %v2148_v11 }
 0xfe2   :  { %v3715_v12 = vpop.eup %3714 }
 0xfe3   :  { %v2164_v14 = vmul.f32 %v3715_v12, %v4368_v45  ;;  %v2513_v15 = vpop.permute.xlu0 %2512 }
 0xfe4   :  { %v2518_v10 = vsel %vm818_vm8, %v2513_v15, 0 }
 0xfe5   :  { %3513 = vmatpush3.bf16.msra.mxu1 %v2518_v10  ;;  %v2172_v17 = vpack.c.bf16 %v2164_v14, %v2164_v14 }
 0xfe6   :  { %3526 = vmatprep.subr.bf16.mxu1 %v3727_v6 }
 0xfe7   :  { %3497 = vmatmul.mubr.msk.bf16.vlgmr.msra.gmra.mrb[68].mxu0 %vm301_vm7, %v2172_v17 }
 0xfe8   :  { %3507 = vmatpush3.bf16.msra.mxu0 %v2470_v21  ;;  %3515 = vmatmul.mubr.msk.bf16.vlgmr.msra.gmra.mrb[72].mxu1 %vm301_vm7, %v2175_v18 }
 0xfe9   :  { %3508 = vmatprep.mubr.msk.bf16.mxu0 %vm3729_vm5, %v3727_v6  ;;  %3518 = vmatprep.subr.bf16.mxu0 %v3727_v6 }
 0xfea   :  { %v3717_v22 = vpop.eup %3716  ;;  %3530 = vmatprep.mubr.msk.bf16.mxu1 %vm3729_vm5, %v3727_v6 }
 0xfeb   :  { %v2166_v1 = vmul.f32 %v3717_v22, %v4372_v47 }
 0xfed   :  { %v2174_v23 = vpack.c.bf16 %v2166_v1, %v2166_v1 }
 0xfef   :  { %3509 = vmatmul.mubr.msk.bf16.vlgmr.msra.gmra.mrb[72].mxu0 %vm301_vm7, %v2174_v23 }
 0xff0   :  { %3522 = vmatprep.mubr.msk.bf16.mxu0 %vm3729_vm5, %v3727_v6  ;;  %3519 = vmatpush3.bf16.msra.mxu0 %v3632_v50 }
 0xff1   :  { %3520 = vmatprep.subr.bf16.mxu0 %v3727_v6 }
 0xff4   :  { %3521 = vmatpush3.bf16.msra.mxu0 %v3633_v52 }
 0xff5   :  { %3534 = vmatprep.subr.bf16.mxu0 %v3727_v6 }
0x1059   :  { %v2218_v0 = vpop.f32.mrb[60].mxu0 }
0x105a   :  { %v3474_v25 = vpop.f32.mrb[61].mxu0 }
0x105b   :  { %v2221_v26 = vpop.f32.mrb[62].mxu0 }
0x105c   :  { %v3475_v28 = vpop.f32.mrb[63].mxu0 }
0x107d   :  { %v2266_v31 = vpop.f32.mrb[60].mxu1 }
0x107e   :  { %v3480_v57 = vpop.f32.mrb[61].mxu1 }
0x107f   :  { %v2269_v56 = vpop.f32.mrb[62].mxu1 }
0x1080   :  { %v3481_v35 = vpop.f32.mrb[63].mxu1 }
0x1085   :  { %v2314_v24 = vpop.f32.mrb[64].mxu0  ;;  %v2362_v40 = vpop.f32.mrb[64].mxu1 }
0x1086   :  { %v3486_v43 = vpop.f32.mrb[65].mxu0  ;;  %v3492_v42 = vpop.f32.mrb[65].mxu1 }
0x1087   :  { %v2317_v44 = vpop.f32.mrb[66].mxu0  ;;  %v2365_v45 = vpop.f32.mrb[66].mxu1 }
0x1088   :  { %v3487_v46 = vpop.f32.mrb[67].mxu0  ;;  %v3493_v47 = vpop.f32.mrb[67].mxu1  ;;  %v3635_v44 = vld [vmem:[%s4539_s9 + $0x18] sm:$0xff]   ;;  %v3636_v45 = vld [vmem:[%s4540_s11 + $0x40] sm:$0xff]  }
0x1089   :  { %v3637_v46 = vld [vmem:[%s4540_s11 + $0x48] sm:$0xff]   ;;  %v3638_v47 = vld [vmem:[%s4540_s11 + $0x50] sm:$0xff]  }
0x108d   :  { %v2458_v37 = vpop.f32.mrb[68].mxu1 }
0x108e   :  { %v3601_v38 = vpack.i.bf16 %v2458_v37, %v2266_v31  ;;  %v3504_v27 = vpop.f32.mrb[69].mxu1  ;;  %v3639_v37 = vld [vmem:[%s4540_s11 + $0x58] sm:$0xff]  }
0x108f   :  { %v2461_v48 = vpop.f32.mrb[70].mxu1  ;;  %v3641_v27 = vld [vmem:[%s4540_s11 + $0x68] sm:$0xff]  }
0x1090   :  { %3602 = vrot.lane.b32.xlu1 %v3601_v38, %s3735_s28  ;;  %v3505_v49 = vpop.f32.mrb[71].mxu1  ;;  %v3640_v38 = vld [vmem:[%s4540_s11 + $0x60] sm:$0xff]  }
0x10ba   :  { %v2410_v51 = vpop.f32.mrb[68].mxu0 }
0x10bb   :  { %v3498_v54 = vpop.f32.mrb[69].mxu0  ;;  %v2554_v33 = vpop.f32.mrb[72].mxu1 }
0x10bc   :  { %v3611_v55 = vpack.i.bf16 %v2554_v33, %v2362_v40  ;;  %v2413_v58 = vpop.f32.mrb[70].mxu0  ;;  %v3516_v60 = vpop.f32.mrb[73].mxu1 }
0x10bd   :  { %v3499_v63 = vpop.f32.mrb[71].mxu0  ;;  %v2557_v2 = vpop.f32.mrb[74].mxu1  ;;  %v3100_v58 = vld [vmem:[%s4541_s7 + $0x1] ss:$0 sm:$0xff] }
0x10be   :  { %3612 = vrot.lane.b32.xlu1 %v3611_v55, %s3737_s0  ;;  %v3517_v61 = vpop.f32.mrb[75].mxu1 }
0x10bf   :  { %v3101_v61 = vld [vmem:[%s4542_s8 + $0x1] ss:$0 sm:$0xff] }
0x10c2   :  { %v2506_v62 = vpop.f32.mrb[72].mxu0 }
0x10c3   :  { %v3606_v3 = vpack.i.bf16 %v2506_v62, %v2314_v24  ;;  %v3510_v59 = vpop.f32.mrb[73].mxu0 }
0x10c4   :  { %v2509_v34 = vpop.f32.mrb[74].mxu0 }
0x10c5   :  { %3607 = vrot.lane.b32.xlu0 %v3606_v3, %s3736_s29  ;;  %v3511_v5 = vpop.f32.mrb[75].mxu0 }
0x10c6   :  { %v3642_v5 = vld [vmem:[%s4540_s11 + $0x70] sm:$0xff]  }
0x1102   :  { %v3603_v30 = vpop.permute.xlu1 %3602 }
0x1103   :  { %v3605_v32 = vunpack.i.h.bf16 %v3603_v30  ;;  %v3604_v36 = vunpack.i.l.bf16 %v3603_v30  ;;  %v3643_v30 = vld [vmem:[%s4540_s11 + $0x78] sm:$0xff]  }
0x1105   :  { %v2585_v8 = vsel %vm301_vm7, %v2410_v51, %v3605_v32  ;;  %v2584_v53 = vsel %vm301_vm7, %v2218_v0, %v3604_v36  ;;  %v3107_v32 = vld [vmem:[%s4543_s10 + $0x1] ss:$0 sm:$0xff] }
0x1130   :  { %v3613_v29 = vpop.permute.xlu1 %3612 }
0x1131   :  { %v3615_v9 = vunpack.i.h.bf16 %v3613_v29  ;;  %v3614_v4 = vunpack.i.l.bf16 %v3613_v29 }
0x1137   :  { %v3608_v41 = vpop.permute.xlu0 %3607 }
0x1138   :  { %v3610_v39 = vunpack.i.h.bf16 %v3608_v41  ;;  %v3609_v7 = vunpack.i.l.bf16 %v3608_v41 }
0x113a   :  { %v2586_v11 = vsel %vm1224_vm9, %v2584_v53, %v3609_v7  ;;  %v2587_v12 = vsel %vm1224_vm9, %v2585_v8, %v3610_v39 }
0x113b   :  { %v2588_v13 = vsel %vm1227_vm10, %v2586_v11, %v3614_v4  ;;  %v2589_v14 = vsel %vm1227_vm10, %v2587_v12, %v3615_v9  ;;  %v3128_v11 = vld [vmem:[%s4544_s12 + $0x1] ss:$0 sm:$0xff] }
0x113c   :  { %v2590_v15 = vpack.c.bf16 %v2589_v14, %v2588_v13 }
0x113e   :  { %3523 = vmatmul.mubr.msk.bf16.vlgmr.msra.gmra.mrb[76].mxu0 %vm225_vm6, %v2590_v15 }
0x113f   :  { %3550 = vmatprep.mubr.msk.bf16.mxu0 %vm3729_vm5, %v3727_v6  ;;  %3535 = vmatpush3.bf16.msra.mxu0 %v3636_v45 }
0x1140   :  { %3536 = vmatprep.subr.bf16.mxu0 %v3727_v6 }
0x1143   :  { %3537 = vmatpush3.bf16.msra.mxu0 %v3637_v46 }
0x1144   :  { %3538 = vmatprep.subr.bf16.mxu0 %v3727_v6 }
0x1147   :  { %3539 = vmatpush3.bf16.msra.mxu0 %v3638_v47  ;;  %v3139_v47 = vld [vmem:[%s4545_s13 + $0x1] ss:$0 sm:$0xff] }
0x1148   :  { %3540 = vmatprep.subr.bf16.mxu0 %v3727_v6 }
0x114b   :  { %3541 = vmatpush3.bf16.msra.mxu0 %v3639_v37 }
0x114c   :  { %3542 = vmatprep.subr.bf16.mxu0 %v3727_v6 }
0x114f   :  { %3543 = vmatpush3.bf16.msra.mxu0 %v3640_v38 }
0x1150   :  { %3544 = vmatprep.subr.bf16.mxu0 %v3727_v6 }
0x1153   :  { %3545 = vmatpush3.bf16.msra.mxu0 %v3641_v27 }
0x1154   :  { %3546 = vmatprep.subr.bf16.mxu0 %v3727_v6 }
0x1157   :  { %3547 = vmatpush3.bf16.msra.mxu0 %v3642_v5 }
0x1158   :  { %3548 = vmatprep.subr.bf16.mxu0 %v3727_v6 }
0x115b   :  { %3549 = vmatpush3.bf16.msra.mxu0 %v3643_v30 }
0x1211   :  { %v2653_v10 = vpop.f32.mrb[76].mxu0 }
0x1212   :  { %v2654_v17 = vadd.f32 %v3094_v16, %v2653_v10  ;;  %v3524_v18 = vpop.f32.mrb[77].mxu0 }
0x1213   :  { %v2656_v21 = vpop.f32.mrb[78].mxu0 }
0x1214   :  { %v2657_v22 = vadd.f32 %v3094_v16, %v2656_v21  ;;  %v3525_v1 = vpop.f32.mrb[79].mxu0  ;;  %v2660_v23 = vadd.f32 %v2654_v17, %v4200_v19 }
0x1216   :  { %v2666_v0 = vsel %vm225_vm6, %v2660_v23, 0.0  ;;  %v2661_v25 = vadd.f32 %v2657_v22, %v4202_v20  ;;  %v3634_v20 = vld [vmem:[%s4539_s9 + $0x10] sm:$0xff]  }
0x1217   :  { %2667 = vadd.xlane.f32.xlu0 %v2666_v0  ;;  %3527 = vmatpush3.bf16.msra.mxu1 %v3634_v20 }
0x1218   :  { %v2669_v26 = vsel %vm225_vm6, %v2661_v25, 0.0  ;;  %3528 = vmatprep.subr.bf16.mxu1 %v3727_v6 }
0x1219   :  { %2670 = vadd.xlane.f32.xlu1 %v2669_v26 }
0x121b   :  { %3529 = vmatpush3.bf16.msra.mxu1 %v3635_v44 }
0x121c   :  { %3554 = vmatprep.subr.bf16.mxu1 %v3727_v6 }
0x12a4   :  { %v2668_v28 = vpop.xlane.xlu0 %2667 }
0x12a5   :  { %v2672_v31 = vmul.f32 0.03125, %v2668_v28 }
0x12a6   :  { %v2671_v57 = vpop.xlane.xlu1 %2670 }
0x12a7   :  { %v2674_v56 = vsub.f32 %v2660_v23, %v2672_v31  ;;  %v2673_v35 = vmul.f32 0.03125, %v2671_v57 }
0x12a9   :  { %v2675_v24 = vsub.f32 %v2661_v25, %v2673_v35  ;;  %v2676_v40 = vmul.f32 %v2674_v56, %v2674_v56 }
0x12ab   :  { %v2678_v43 = vsel %vm225_vm6, %v2676_v40, 0.0  ;;  %v2677_v42 = vmul.f32 %v2675_v24, %v2675_v24  ;;  %v3645_v40 = vld [vmem:[%s4547_s15 + $0x8] sm:$0xff]  }
0x12ac   :  { %2679 = vadd.xlane.f32.xlu0 %v2678_v43 }
0x12ad   :  { %v2681_v19 = vsel %vm225_vm6, %v2677_v42, 0.0 }
0x12b0   :  { %2682 = vadd.xlane.f32.xlu0 %v2681_v19 }
0x1339   :  { %v2680_v48 = vpop.xlane.xlu0 %2679 }
0x133a   :  { %v2684_v49 = vmul.f32 0.03125, %v2680_v48 }
0x133c   :  { %v2686_v50 = vadd.f32 1e-05, %v2684_v49 }
0x133d   :  { %v2683_v51 = vpop.xlane.xlu0 %2682 }
0x133e   :  { %3718 = vrsqrt.f32 %v2686_v50  ;;  %v2685_v52 = vmul.f32 0.03125, %v2683_v51 }
0x1340   :  { %v2687_v54 = vadd.f32 1e-05, %v2685_v52 }
0x1342   :  { %3720 = vrsqrt.f32 %v2687_v54  ;;  %v3141_v54 = vld [vmem:[%s4548_s16] ss:$0 sm:$0xff] }
0x1348   :  { %v3719_v33 = vpop.eup %3718 }
0x1349   :  { %v2690_v55 = vmul.f32 %v3719_v33, %v2674_v56 }
0x134b   :  { %v2698_v63 = vmul.f32 %v3100_v58, %v2690_v55 }
0x134c   :  { %v3721_v60 = vpop.eup %3720 }
0x134d   :  { %v2691_v2 = vmul.f32 %v3721_v60, %v2675_v24  ;;  %v2706_v3 = vadd.f32 %v3101_v61, %v2698_v63  ;;  %v3644_v24 = vld [vmem:[%s4547_s15] sm:$0xff]  }
0x134f   :  { %v2699_v62 = vmul.f32 %v3100_v58, %v2691_v2 }
0x1351   :  { %v2707_v59 = vadd.f32 %v3101_v61, %v2699_v62 }
0x1353   :  { %v2708_v34 = vpack.c.bf16 %v2707_v59, %v2706_v3 }
0x1355   :  { %3531 = vmatmul.mubr.msk.bf16.vlgmr.msra.gmra.mrb[76].mxu1 %vm225_vm6, %v2708_v34 }
0x1356   :  { %3558 = vmatprep.mubr.msk.bf16.mxu1 %vm3729_vm5, %v3727_v6  ;;  %3555 = vmatpush3.bf16.msra.mxu1 %v3644_v24 }
0x1357   :  { %3556 = vmatprep.subr.bf16.mxu1 %v3727_v6  ;;  %v3140_v6 = vld [vmem:[%s4546_s14 + $0x1] ss:$0 sm:$0xff] }
0x135a   :  { %3557 = vmatpush3.bf16.msra.mxu1 %v3645_v40 }
0x1428   :  { %v2771_v36 = vpop.f32.mrb[76].mxu1 }
0x1429   :  { %v2772_v29 = vadd.f32 %v3107_v32, %v2771_v36  ;;  %v3532_v41 = vpop.f32.mrb[77].mxu1 }
0x142a   :  { %v2774_v39 = vpop.f32.mrb[78].mxu1 }
0x142b   :  { %v2775_v7 = vadd.f32 %v3107_v32, %v2774_v39  ;;  %v3533_v8 = vpop.f32.mrb[79].mxu1  ;;  %v2778_v53 = vmax.f32 %v2772_v29, 0.0 }
0x142d   :  { %v2779_v9 = vmax.f32 %v2775_v7, 0.0 }
0x142f   :  { %v2780_v4 = vpack.c.bf16 %v2779_v9, %v2778_v53 }
0x1431   :  { %3551 = vmatmul.mubr.bf16.vlgmr.msra.gmra.mrb[80].mxu0 %v2780_v4 }
0x1504   :  { %v2888_v12 = vpop.f32.mrb[80].mxu0 }
0x1505   :  { %v2889_v13 = vadd.f32 %v3128_v11, %v2888_v12  ;;  %v3552_v14 = vpop.f32.mrb[81].mxu0 }
0x1506   :  { %v2891_v15 = vpop.f32.mrb[82].mxu0 }
0x1507   :  { %v2892_v16 = vadd.f32 %v3128_v11, %v2891_v15  ;;  %v3553_v10 = vpop.f32.mrb[83].mxu0  ;;  %v2895_v17 = vadd.f32 %v2889_v13, %v2706_v3 }
0x1509   :  { %v2896_v18 = vadd.f32 %v2892_v16, %v2707_v59  ;;  %v2901_v21 = vsel %vm225_vm6, %v2895_v17, 0.0 }
0x150a   :  { %2902 = vadd.xlane.f32.xlu1 %v2901_v21 }
0x150b   :  { %v2904_v22 = vsel %vm225_vm6, %v2896_v18, 0.0 }
0x150c   :  { %2905 = vadd.xlane.f32.xlu0 %v2904_v22 }
0x1597   :  { %v2903_v1 = vpop.xlane.xlu1 %2902 }
0x1598   :  { %v2907_v23 = vmul.f32 0.03125, %v2903_v1 }
0x1599   :  { %v2906_v0 = vpop.xlane.xlu0 %2905 }
0x159a   :  { %v2909_v25 = vsub.f32 %v2895_v17, %v2907_v23  ;;  %v2908_v26 = vmul.f32 0.03125, %v2906_v0 }
0x159c   :  { %v2910_v28 = vsub.f32 %v2896_v18, %v2908_v26  ;;  %v2911_v31 = vmul.f32 %v2909_v25, %v2909_v25 }
0x159e   :  { %v2913_v57 = vsel %vm225_vm6, %v2911_v31, 0.0  ;;  %v2912_v56 = vmul.f32 %v2910_v28, %v2910_v28 }
0x159f   :  { %2914 = vadd.xlane.f32.xlu1 %v2913_v57 }
0x15a0   :  { %v2916_v35 = vsel %vm225_vm6, %v2912_v56, 0.0 }
0x15a1   :  { %2917 = vadd.xlane.f32.xlu0 %v2916_v35 }
0x162c   :  { %v2915_v43 = vpop.xlane.xlu1 %2914 }
0x162d   :  { %v2919_v42 = vmul.f32 0.03125, %v2915_v43 }
0x162e   :  { %v2918_v19 = vpop.xlane.xlu0 %2917 }
0x162f   :  { %v2921_v20 = vadd.f32 1e-05, %v2919_v42  ;;  %v2920_v44 = vmul.f32 0.03125, %v2918_v19 }
0x1631   :  { %3722 = vrsqrt.f32 %v2921_v20  ;;  %v2922_v45 = vadd.f32 1e-05, %v2920_v44 }
0x1633   :  { %3724 = vrsqrt.f32 %v2922_v45 }
0x163b   :  { %v3723_v46 = vpop.eup %3722 }
0x163c   :  { %v2925_v37 = vmul.f32 %v3723_v46, %v2909_v25 }
0x163d   :  { %v3725_v38 = vpop.eup %3724 }
0x163e   :  { %v2933_v27 = vmul.f32 %v3139_v47, %v2925_v37  ;;  %v2926_v48 = vmul.f32 %v3725_v38, %v2910_v28 }
0x1640   :  { %v2934_v49 = vmul.f32 %v3139_v47, %v2926_v48  ;;  %v2941_v50 = vadd.f32 %v3140_v6, %v2933_v27 }
0x1642   :  { %v2942_v51 = vadd.f32 %v3140_v6, %v2934_v49 }
0x1644   :  { %v2943_v52 = vpack.c.bf16 %v2942_v51, %v2941_v50 }
0x1646   :  { %3559 = vmatmul.mubr.msk.bf16.vlgmr.msra.gmra.mrb[80].mxu1 %vm225_vm6, %v2943_v52 }
0x1719   :  { %v3004_v33 = vpop.f32.mrb[80].mxu1 }
0x171a   :  { %v3005_v55 = vadd.f32 %v3141_v54, %v3004_v33  ;;  %v3560_v58 = vpop.f32.mrb[81].mxu1 }
0x171b   :  { %v3007_v60 = vpop.f32.mrb[82].mxu1 }
0x171c   :  { %3012 = vst.msk [vmem:[%s4549_s17] sm:$0xff] %vm3011_vm11, %v3005_v55  ;;  %v3008_v63 = vadd.f32 %v3141_v54, %v3007_v60  ;;  %v3561_v2 = vpop.f32.mrb[83].mxu1 }
0x171e   :  { %3013 = vst.msk [vmem:[%s4549_s17 + $0x8] sm:$0xff] %vm3011_vm11, %v3008_v63 }

</bundles_post_ra>
